<compile_context>
chip_gen: v6e
topology: v6e:2x2x1
jax: 0.10.0
libtpu: 0.0.40
codegen_flags: <defaults>
</compile_context>

<pallas_src>
import functools

import jax
import jax.numpy as jnp
from jax.experimental import pallas as pl
from jax.experimental.pallas import tpu as pltpu


# ----------------------------------------------------------------------------
# In-kernel helper: fully unrolled single-layer LSTM.
#   x_stk : (T*B, D) timestep-major stacked input.
#   wih   : (D, 4H)   whh : (H, 4H)   b : (1, 4H) = b_ih + b_hh (pre-merged).
# The input projection of all T timesteps is ONE matmul; only the recurrent
# h @ W_hh matmul is inside the unrolled loop (skipped at t=0, h0 == 0).
# Returns a Python list of T hidden states, each (B, H).
# ----------------------------------------------------------------------------
def _lstm_layer_stacked(x_stk, T, B, wih, whh, b):
    H = whh.shape[0]
    gx = jnp.dot(x_stk, wih, preferred_element_type=jnp.float32) + b    # (T*B, 4H)
    h = None
    c = None
    outs = []
    for t in range(T):
        g = gx[t * B:(t + 1) * B, :]                                     # (B, 4H)
        if t > 0:
            g = g + jnp.dot(h, whh, preferred_element_type=jnp.float32)
        i = jax.nn.sigmoid(g[:, 0 * H:1 * H])
        f = jax.nn.sigmoid(g[:, 1 * H:2 * H])
        gg = jnp.tanh(g[:, 2 * H:3 * H])
        o = jax.nn.sigmoid(g[:, 3 * H:4 * H])
        c = (i * gg) if t == 0 else (f * c + i * gg)
        h = o * jnp.tanh(c)
        outs.append(h)
    return outs


# ----------------------------------------------------------------------------
# Fused CA2_AF_LSTM forward kernel (eval mode).
# ----------------------------------------------------------------------------
def _ca2_fused_kernel(
        xb_ref, xf_ref,
        wih1_ref, whh1_ref, b1_ref, bn1_scale_ref, bn1_shift_ref,
        wih2_ref, whh2_ref, b2_ref, bn2_scale_ref, bn2_shift_ref,
        wih3_ref, whh3_ref, b3_ref,
        wihf_ref, whhf_ref, bf_ref,
        out_ref, *, B, Tb, Tf):
    # ---------------- beta network ----------------
    h1 = _lstm_layer_stacked(xb_ref[...], Tb, B,
                             wih1_ref[...], whh1_ref[...], b1_ref[...])   # Tb x (B, 32)
    # extract1 / dropout1 (eval) are identities; eval BatchNorm1d(2) + ReLU fused:
    h1 = [jnp.maximum(h1[t] * bn1_scale_ref[t] + bn1_shift_ref[t], 0.0) for t in range(Tb)]
    x2 = jnp.concatenate(h1, axis=0)                                      # (Tb*B, 32)

    h2 = _lstm_layer_stacked(x2, Tb, B,
                             wih2_ref[...], whh2_ref[...], b2_ref[...])   # Tb x (B, 16)
    h2 = [jnp.maximum(h2[t] * bn2_scale_ref[t] + bn2_shift_ref[t], 0.0) for t in range(Tb)]
    x3 = jnp.concatenate(h2, axis=0)                                      # (Tb*B, 16)

    beta = _lstm_layer_stacked(x3, Tb, B,
                               wih3_ref[...], whh3_ref[...], b3_ref[...])  # Tb x (B, K)

    # ---------------- factor network ----------------
    factor = _lstm_layer_stacked(xf_ref[...], Tf, B,
                                 wihf_ref[...], whhf_ref[...], bf_ref[...])  # Tf x (B, F)

    # ---------------- beta @ factor (torch batched matmul) ----------------
    # out[:, q, :] = sum_k beta[q][:, k] * factor[k][:, :]   (K = Tf, tiny -> VPU FMAs)
    rows = []
    for q in range(Tb):
        acc = beta[q][:, 0:1] * factor[0]
        for k in range(1, Tf):
            acc = acc + beta[q][:, k:k + 1] * factor[k]
        rows.append(acc)
    out_ref[...] = jnp.stack(rows, axis=1).astype(out_ref.dtype)          # (B, Tb, F)


# ----------------------------------------------------------------------------
# Wrapper: one pallas_call, everything resident in VMEM/SMEM.
# ----------------------------------------------------------------------------
def ca2_af_lstm_forward(params, x_beta, x_factor):
    B, Tb, Db = x_beta.shape
    _, Tf, Df = x_factor.shape
    out_beta = params['aflstm2']['b'].shape[-1] // 4
    out_factor = params['factor']['b'].shape[-1] // 4
    # torch `@` contracts beta's last dim against factor's sequence dim.
    assert Tf == out_beta, "beta @ factor requires x_factor seq_len == output_dim_beta"

    # One-time layout plumbing in XLA: timestep-major stacked inputs so each
    # LSTM layer's input projection is a single matmul inside the kernel.
    xb_stk = jnp.transpose(x_beta.astype(jnp.float32), (1, 0, 2)).reshape(Tb * B, Db)
    xf_stk = jnp.transpose(x_factor.astype(jnp.float32), (1, 0, 2)).reshape(Tf * B, Df)

    vmem = pl.BlockSpec(memory_space=pltpu.MemorySpace.VMEM)
    smem = pl.BlockSpec(memory_space=pltpu.MemorySpace.SMEM)
    in_specs = [
        vmem, vmem,                      # x_beta (stacked), x_factor (stacked)
        vmem, vmem, vmem, smem, smem,    # hidden1 + bn1
        vmem, vmem, vmem, smem, smem,    # hidden2 + bn2
        vmem, vmem, vmem,                # aflstm2
        vmem, vmem, vmem,                # factor LSTM
    ]

    kernel = functools.partial(_ca2_fused_kernel, B=B, Tb=Tb, Tf=Tf)
    return pl.pallas_call(
        kernel,
        out_shape=jax.ShapeDtypeStruct((B, Tb, out_factor), jnp.float32),
        in_specs=in_specs,
        out_specs=vmem,
    )(
        xb_stk, xf_stk,
        params['hidden1']['wih'], params['hidden1']['whh'], params['hidden1']['b'],
        params['bn1']['scale'], params['bn1']['shift'],
        params['hidden2']['wih'], params['hidden2']['whh'], params['hidden2']['b'],
        params['bn2']['scale'], params['bn2']['shift'],
        params['aflstm2']['wih'], params['aflstm2']['whh'], params['aflstm2']['b'],
        params['factor']['wih'], params['factor']['whh'], params['factor']['b'],
    )


# ----------------------------------------------------------------------------
# Parameter construction: nn.LSTM-equivalent init, pre-fused for the kernel
# (transposed weights, merged biases, folded eval-mode BatchNorm affine).
# ----------------------------------------------------------------------------
def init_lstm_params(key, input_dim, hidden_dim):
    k = 1.0 / jnp.sqrt(jnp.float32(hidden_dim))
    k1, k2, k3, k4 = jax.random.split(key, 4)
    w_ih = jax.random.uniform(k1, (4 * hidden_dim, input_dim), jnp.float32, -k, k)
    w_hh = jax.random.uniform(k2, (4 * hidden_dim, hidden_dim), jnp.float32, -k, k)
    b_ih = jax.random.uniform(k3, (4 * hidden_dim,), jnp.float32, -k, k)
    b_hh = jax.random.uniform(k4, (4 * hidden_dim,), jnp.float32, -k, k)
    return dict(
        wih=jnp.transpose(w_ih),                          # (D, 4H)
        whh=jnp.transpose(w_hh),                          # (H, 4H)
        b=(b_ih + b_hh).reshape(1, 4 * hidden_dim),       # (1, 4H)
    )


def init_batchnorm_params(num_features, eps=1e-5):
    # PyTorch defaults: weight=1, bias=0, running_mean=0, running_var=1 (eval mode).
    weight = jnp.ones((num_features,), jnp.float32)
    bias = jnp.zeros((num_features,), jnp.float32)
    running_mean = jnp.zeros((num_features,), jnp.float32)
    running_var = jnp.ones((num_features,), jnp.float32)
    scale = weight / jnp.sqrt(running_var + eps)
    shift = bias - running_mean * scale
    return dict(scale=scale, shift=shift)                 # each (C,)


def init_ca2_params(key, input_dim_beta, output_dim_beta,
                    input_dim_factor, output_dim_factor):
    k1, k2, k3, k4 = jax.random.split(key, 4)
    return dict(
        hidden1=init_lstm_params(k1, input_dim_beta, 32),    # AF_LSTM(in_beta, 32, 1000, 32)
        bn1=init_batchnorm_params(2),                         # BatchNorm1d(2)
        hidden2=init_lstm_params(k2, 32, 16),                 # AF_LSTM(32, 16, 1000, 16)
        bn2=init_batchnorm_params(2),                         # BatchNorm1d(2)
        aflstm2=init_lstm_params(k3, 16, output_dim_beta),    # AF_LSTM(16, out_beta, 1000, out_beta)
        factor=init_lstm_params(k4, input_dim_factor, output_dim_factor),
    )


if __name__ == "__main__":
    # ParamsIO_AF_LSTM equivalent (small shapes)
    input_dim_beta = 8
    output_dim_beta = 4
    input_dim_factor = 6
    output_dim_factor = 4

    N = 4                          # batch
    SEQ_BETA = 2                   # forced by BatchNorm1d(2) on (N, seq, H)
    SEQ_FACTOR = output_dim_beta   # so that beta @ factor contracts correctly

    key = jax.random.PRNGKey(0)
    kp, kb, kf = jax.random.split(key, 3)
    params = init_ca2_params(kp, input_dim_beta, output_dim_beta,
                             input_dim_factor, output_dim_factor)

    x_beta = jax.random.normal(kb, (N, SEQ_BETA, input_dim_beta), jnp.float32)
    x_factor = jax.random.normal(kf, (N, SEQ_FACTOR, input_dim_factor), jnp.float32)

    forward = jax.jit(ca2_af_lstm_forward)
    out = forward(params, x_beta, x_factor)
    jax.block_until_ready(out)
    assert out.shape == (N, SEQ_BETA, output_dim_factor)
    print("KERNEL_OK")
</pallas_src>

<mosaic_0001>
module attributes {stable_mosaic.version = 11 : i64} {
  func.func @_ca2_fused_kernel(%arg0: memref<8x8xf32, #tpu.memory_space<vmem>>, %arg1: memref<16x6xf32, #tpu.memory_space<vmem>>, %arg2: memref<8x128xf32, #tpu.memory_space<vmem>>, %arg3: memref<32x128xf32, #tpu.memory_space<vmem>>, %arg4: memref<1x128xf32, #tpu.memory_space<vmem>>, %arg5: memref<2xf32, #tpu.memory_space<smem>>, %arg6: memref<2xf32, #tpu.memory_space<smem>>, %arg7: memref<32x64xf32, #tpu.memory_space<vmem>>, %arg8: memref<16x64xf32, #tpu.memory_space<vmem>>, %arg9: memref<1x64xf32, #tpu.memory_space<vmem>>, %arg10: memref<2xf32, #tpu.memory_space<smem>>, %arg11: memref<2xf32, #tpu.memory_space<smem>>, %arg12: memref<16x16xf32, #tpu.memory_space<vmem>>, %arg13: memref<4x16xf32, #tpu.memory_space<vmem>>, %arg14: memref<1x16xf32, #tpu.memory_space<vmem>>, %arg15: memref<6x16xf32, #tpu.memory_space<vmem>>, %arg16: memref<4x16xf32, #tpu.memory_space<vmem>>, %arg17: memref<1x16xf32, #tpu.memory_space<vmem>>, %arg18: memref<4x2x4xf32, #tpu.memory_space<vmem>>) attributes {dimension_semantics = [], scalar_prefetch = 0 : i64, scratch_operands = 0 : i64, tpu.core_type = #tpu.core_type<tc>} {
    %c0 = arith.constant 0 : index
    %c0_0 = arith.constant 0 : index
    %0 = vector.load %arg0[%c0, %c0_0] : memref<8x8xf32, #tpu.memory_space<vmem>>, vector<8x8xf32>
    %c0_1 = arith.constant 0 : index
    %c0_2 = arith.constant 0 : index
    %1 = vector.load %arg2[%c0_1, %c0_2] : memref<8x128xf32, #tpu.memory_space<vmem>>, vector<8x128xf32>
    %c0_3 = arith.constant 0 : index
    %c0_4 = arith.constant 0 : index
    %2 = vector.load %arg3[%c0_3, %c0_4] : memref<32x128xf32, #tpu.memory_space<vmem>>, vector<32x128xf32>
    %c0_5 = arith.constant 0 : index
    %c0_6 = arith.constant 0 : index
    %3 = vector.load %arg4[%c0_5, %c0_6] : memref<1x128xf32, #tpu.memory_space<vmem>>, vector<1x128xf32>
    %cst = arith.constant dense<0.000000e+00> : vector<8x128xf32>
    %4 = tpu.matmul %0, %1, %cst {dimension_numbers = #tpu.dot_dimension_numbers<[1], [0], [0], [1], [0, 0, 1, 1], [], []>} : vector<8x8xf32>, vector<8x128xf32>, vector<8x128xf32> -> vector<8x128xf32>
    %5 = vector.broadcast %3 : vector<1x128xf32> to vector<8x128xf32>
    %6 = arith.addf %4, %5 : vector<8x128xf32>
    %7 = vector.extract_strided_slice %6 {offsets = [0, 0], sizes = [4, 128], strides = [1, 1]} : vector<8x128xf32> to vector<4x128xf32>
    %8 = vector.extract_strided_slice %7 {offsets = [0, 0], sizes = [4, 32], strides = [1, 1]} : vector<4x128xf32> to vector<4x32xf32>
    %9 = arith.negf %8 : vector<4x32xf32>
    %10 = math.exp %9 : vector<4x32xf32>
    %cst_7 = arith.constant 1.000000e+00 : f32
    %11 = vector.broadcast %cst_7 : f32 to vector<4x32xf32>
    %12 = arith.addf %11, %10 : vector<4x32xf32>
    %13 = arith.divf %11, %12 : vector<4x32xf32>
    %14 = vector.extract_strided_slice %7 {offsets = [0, 64], sizes = [4, 32], strides = [1, 1]} : vector<4x128xf32> to vector<4x32xf32>
    %15 = math.tanh %14 : vector<4x32xf32>
    %16 = vector.extract_strided_slice %7 {offsets = [0, 96], sizes = [4, 32], strides = [1, 1]} : vector<4x128xf32> to vector<4x32xf32>
    %17 = arith.negf %16 : vector<4x32xf32>
    %18 = math.exp %17 : vector<4x32xf32>
    %cst_8 = arith.constant 1.000000e+00 : f32
    %19 = vector.broadcast %cst_8 : f32 to vector<4x32xf32>
    %20 = arith.addf %19, %18 : vector<4x32xf32>
    %21 = arith.divf %19, %20 : vector<4x32xf32>
    %22 = arith.mulf %13, %15 : vector<4x32xf32>
    %23 = math.tanh %22 : vector<4x32xf32>
    %24 = arith.mulf %21, %23 : vector<4x32xf32>
    %25 = vector.extract_strided_slice %6 {offsets = [4, 0], sizes = [4, 128], strides = [1, 1]} : vector<8x128xf32> to vector<4x128xf32>
    %cst_9 = arith.constant dense<0.000000e+00> : vector<4x128xf32>
    %26 = tpu.matmul %24, %2, %cst_9 {dimension_numbers = #tpu.dot_dimension_numbers<[1], [0], [0], [1], [0, 0, 1, 1], [], []>} : vector<4x32xf32>, vector<32x128xf32>, vector<4x128xf32> -> vector<4x128xf32>
    %27 = arith.addf %25, %26 : vector<4x128xf32>
    %28 = vector.extract_strided_slice %27 {offsets = [0, 0], sizes = [4, 32], strides = [1, 1]} : vector<4x128xf32> to vector<4x32xf32>
    %29 = arith.negf %28 : vector<4x32xf32>
    %30 = math.exp %29 : vector<4x32xf32>
    %cst_10 = arith.constant 1.000000e+00 : f32
    %31 = vector.broadcast %cst_10 : f32 to vector<4x32xf32>
    %32 = arith.addf %31, %30 : vector<4x32xf32>
    %33 = arith.divf %31, %32 : vector<4x32xf32>
    %34 = vector.extract_strided_slice %27 {offsets = [0, 32], sizes = [4, 32], strides = [1, 1]} : vector<4x128xf32> to vector<4x32xf32>
    %35 = arith.negf %34 : vector<4x32xf32>
    %36 = math.exp %35 : vector<4x32xf32>
    %cst_11 = arith.constant 1.000000e+00 : f32
    %37 = vector.broadcast %cst_11 : f32 to vector<4x32xf32>
    %38 = arith.addf %37, %36 : vector<4x32xf32>
    %39 = arith.divf %37, %38 : vector<4x32xf32>
    %40 = vector.extract_strided_slice %27 {offsets = [0, 64], sizes = [4, 32], strides = [1, 1]} : vector<4x128xf32> to vector<4x32xf32>
    %41 = math.tanh %40 : vector<4x32xf32>
    %42 = vector.extract_strided_slice %27 {offsets = [0, 96], sizes = [4, 32], strides = [1, 1]} : vector<4x128xf32> to vector<4x32xf32>
    %43 = arith.negf %42 : vector<4x32xf32>
    %44 = math.exp %43 : vector<4x32xf32>
    %cst_12 = arith.constant 1.000000e+00 : f32
    %45 = vector.broadcast %cst_12 : f32 to vector<4x32xf32>
    %46 = arith.addf %45, %44 : vector<4x32xf32>
    %47 = arith.divf %45, %46 : vector<4x32xf32>
    %48 = arith.mulf %39, %22 : vector<4x32xf32>
    %49 = arith.mulf %33, %41 : vector<4x32xf32>
    %50 = arith.addf %48, %49 : vector<4x32xf32>
    %51 = math.tanh %50 : vector<4x32xf32>
    %52 = arith.mulf %47, %51 : vector<4x32xf32>
    %c0_13 = arith.constant 0 : index
    %53 = memref.load %arg5[%c0_13] : memref<2xf32, #tpu.memory_space<smem>>
    %54 = vector.broadcast %53 : f32 to vector<4x32xf32>
    %55 = arith.mulf %24, %54 : vector<4x32xf32>
    %c0_14 = arith.constant 0 : index
    %56 = memref.load %arg6[%c0_14] : memref<2xf32, #tpu.memory_space<smem>>
    %57 = vector.broadcast %56 : f32 to vector<4x32xf32>
    %58 = arith.addf %55, %57 : vector<4x32xf32>
    %cst_15 = arith.constant 0.000000e+00 : f32
    %59 = vector.broadcast %cst_15 : f32 to vector<4x32xf32>
    %60 = arith.maximumf %58, %59 : vector<4x32xf32>
    %c1 = arith.constant 1 : index
    %61 = memref.load %arg5[%c1] : memref<2xf32, #tpu.memory_space<smem>>
    %62 = vector.broadcast %61 : f32 to vector<4x32xf32>
    %63 = arith.mulf %52, %62 : vector<4x32xf32>
    %c1_16 = arith.constant 1 : index
    %64 = memref.load %arg6[%c1_16] : memref<2xf32, #tpu.memory_space<smem>>
    %65 = vector.broadcast %64 : f32 to vector<4x32xf32>
    %66 = arith.addf %63, %65 : vector<4x32xf32>
    %cst_17 = arith.constant 0.000000e+00 : f32
    %67 = vector.broadcast %cst_17 : f32 to vector<4x32xf32>
    %68 = arith.maximumf %66, %67 : vector<4x32xf32>
    %69 = tpu.concatenate %60, %68 in 0 : vector<4x32xf32>, vector<4x32xf32> -> vector<8x32xf32>
    %c0_18 = arith.constant 0 : index
    %c0_19 = arith.constant 0 : index
    %70 = vector.load %arg7[%c0_18, %c0_19] : memref<32x64xf32, #tpu.memory_space<vmem>>, vector<32x64xf32>
    %c0_20 = arith.constant 0 : index
    %c0_21 = arith.constant 0 : index
    %71 = vector.load %arg8[%c0_20, %c0_21] : memref<16x64xf32, #tpu.memory_space<vmem>>, vector<16x64xf32>
    %c0_22 = arith.constant 0 : index
    %c0_23 = arith.constant 0 : index
    %72 = vector.load %arg9[%c0_22, %c0_23] : memref<1x64xf32, #tpu.memory_space<vmem>>, vector<1x64xf32>
    %cst_24 = arith.constant dense<0.000000e+00> : vector<8x64xf32>
    %73 = tpu.matmul %69, %70, %cst_24 {dimension_numbers = #tpu.dot_dimension_numbers<[1], [0], [0], [1], [0, 0, 1, 1], [], []>} : vector<8x32xf32>, vector<32x64xf32>, vector<8x64xf32> -> vector<8x64xf32>
    %74 = vector.broadcast %72 : vector<1x64xf32> to vector<8x64xf32>
    %75 = arith.addf %73, %74 : vector<8x64xf32>
    %76 = vector.extract_strided_slice %75 {offsets = [0, 0], sizes = [4, 64], strides = [1, 1]} : vector<8x64xf32> to vector<4x64xf32>
    %77 = vector.extract_strided_slice %76 {offsets = [0, 0], sizes = [4, 16], strides = [1, 1]} : vector<4x64xf32> to vector<4x16xf32>
    %78 = arith.negf %77 : vector<4x16xf32>
    %79 = math.exp %78 : vector<4x16xf32>
    %cst_25 = arith.constant 1.000000e+00 : f32
    %80 = vector.broadcast %cst_25 : f32 to vector<4x16xf32>
    %81 = arith.addf %80, %79 : vector<4x16xf32>
    %82 = arith.divf %80, %81 : vector<4x16xf32>
    %83 = vector.extract_strided_slice %76 {offsets = [0, 32], sizes = [4, 16], strides = [1, 1]} : vector<4x64xf32> to vector<4x16xf32>
    %84 = math.tanh %83 : vector<4x16xf32>
    %85 = vector.extract_strided_slice %76 {offsets = [0, 48], sizes = [4, 16], strides = [1, 1]} : vector<4x64xf32> to vector<4x16xf32>
    %86 = arith.negf %85 : vector<4x16xf32>
    %87 = math.exp %86 : vector<4x16xf32>
    %cst_26 = arith.constant 1.000000e+00 : f32
    %88 = vector.broadcast %cst_26 : f32 to vector<4x16xf32>
    %89 = arith.addf %88, %87 : vector<4x16xf32>
    %90 = arith.divf %88, %89 : vector<4x16xf32>
    %91 = arith.mulf %82, %84 : vector<4x16xf32>
    %92 = math.tanh %91 : vector<4x16xf32>
    %93 = arith.mulf %90, %92 : vector<4x16xf32>
    %94 = vector.extract_strided_slice %75 {offsets = [4, 0], sizes = [4, 64], strides = [1, 1]} : vector<8x64xf32> to vector<4x64xf32>
    %cst_27 = arith.constant dense<0.000000e+00> : vector<4x64xf32>
    %95 = tpu.matmul %93, %71, %cst_27 {dimension_numbers = #tpu.dot_dimension_numbers<[1], [0], [0], [1], [0, 0, 1, 1], [], []>} : vector<4x16xf32>, vector<16x64xf32>, vector<4x64xf32> -> vector<4x64xf32>
    %96 = arith.addf %94, %95 : vector<4x64xf32>
    %97 = vector.extract_strided_slice %96 {offsets = [0, 0], sizes = [4, 16], strides = [1, 1]} : vector<4x64xf32> to vector<4x16xf32>
    %98 = arith.negf %97 : vector<4x16xf32>
    %99 = math.exp %98 : vector<4x16xf32>
    %cst_28 = arith.constant 1.000000e+00 : f32
    %100 = vector.broadcast %cst_28 : f32 to vector<4x16xf32>
    %101 = arith.addf %100, %99 : vector<4x16xf32>
    %102 = arith.divf %100, %101 : vector<4x16xf32>
    %103 = vector.extract_strided_slice %96 {offsets = [0, 16], sizes = [4, 16], strides = [1, 1]} : vector<4x64xf32> to vector<4x16xf32>
    %104 = arith.negf %103 : vector<4x16xf32>
    %105 = math.exp %104 : vector<4x16xf32>
    %cst_29 = arith.constant 1.000000e+00 : f32
    %106 = vector.broadcast %cst_29 : f32 to vector<4x16xf32>
    %107 = arith.addf %106, %105 : vector<4x16xf32>
    %108 = arith.divf %106, %107 : vector<4x16xf32>
    %109 = vector.extract_strided_slice %96 {offsets = [0, 32], sizes = [4, 16], strides = [1, 1]} : vector<4x64xf32> to vector<4x16xf32>
    %110 = math.tanh %109 : vector<4x16xf32>
    %111 = vector.extract_strided_slice %96 {offsets = [0, 48], sizes = [4, 16], strides = [1, 1]} : vector<4x64xf32> to vector<4x16xf32>
    %112 = arith.negf %111 : vector<4x16xf32>
    %113 = math.exp %112 : vector<4x16xf32>
    %cst_30 = arith.constant 1.000000e+00 : f32
    %114 = vector.broadcast %cst_30 : f32 to vector<4x16xf32>
    %115 = arith.addf %114, %113 : vector<4x16xf32>
    %116 = arith.divf %114, %115 : vector<4x16xf32>
    %117 = arith.mulf %108, %91 : vector<4x16xf32>
    %118 = arith.mulf %102, %110 : vector<4x16xf32>
    %119 = arith.addf %117, %118 : vector<4x16xf32>
    %120 = math.tanh %119 : vector<4x16xf32>
    %121 = arith.mulf %116, %120 : vector<4x16xf32>
    %c0_31 = arith.constant 0 : index
    %122 = memref.load %arg10[%c0_31] : memref<2xf32, #tpu.memory_space<smem>>
    %123 = vector.broadcast %122 : f32 to vector<4x16xf32>
    %124 = arith.mulf %93, %123 : vector<4x16xf32>
    %c0_32 = arith.constant 0 : index
    %125 = memref.load %arg11[%c0_32] : memref<2xf32, #tpu.memory_space<smem>>
    %126 = vector.broadcast %125 : f32 to vector<4x16xf32>
    %127 = arith.addf %124, %126 : vector<4x16xf32>
    %cst_33 = arith.constant 0.000000e+00 : f32
    %128 = vector.broadcast %cst_33 : f32 to vector<4x16xf32>
    %129 = arith.maximumf %127, %128 : vector<4x16xf32>
    %c1_34 = arith.constant 1 : index
    %130 = memref.load %arg10[%c1_34] : memref<2xf32, #tpu.memory_space<smem>>
    %131 = vector.broadcast %130 : f32 to vector<4x16xf32>
    %132 = arith.mulf %121, %131 : vector<4x16xf32>
    %c1_35 = arith.constant 1 : index
    %133 = memref.load %arg11[%c1_35] : memref<2xf32, #tpu.memory_space<smem>>
    %134 = vector.broadcast %133 : f32 to vector<4x16xf32>
    %135 = arith.addf %132, %134 : vector<4x16xf32>
    %cst_36 = arith.constant 0.000000e+00 : f32
    %136 = vector.broadcast %cst_36 : f32 to vector<4x16xf32>
    %137 = arith.maximumf %135, %136 : vector<4x16xf32>
    %138 = tpu.concatenate %129, %137 in 0 : vector<4x16xf32>, vector<4x16xf32> -> vector<8x16xf32>
    %c0_37 = arith.constant 0 : index
    %c0_38 = arith.constant 0 : index
    %139 = vector.load %arg12[%c0_37, %c0_38] : memref<16x16xf32, #tpu.memory_space<vmem>>, vector<16x16xf32>
    %c0_39 = arith.constant 0 : index
    %c0_40 = arith.constant 0 : index
    %140 = vector.load %arg13[%c0_39, %c0_40] : memref<4x16xf32, #tpu.memory_space<vmem>>, vector<4x16xf32>
    %c0_41 = arith.constant 0 : index
    %c0_42 = arith.constant 0 : index
    %141 = vector.load %arg14[%c0_41, %c0_42] : memref<1x16xf32, #tpu.memory_space<vmem>>, vector<1x16xf32>
    %cst_43 = arith.constant dense<0.000000e+00> : vector<8x16xf32>
    %142 = tpu.matmul %138, %139, %cst_43 {dimension_numbers = #tpu.dot_dimension_numbers<[1], [0], [0], [1], [0, 0, 1, 1], [], []>} : vector<8x16xf32>, vector<16x16xf32>, vector<8x16xf32> -> vector<8x16xf32>
    %143 = vector.broadcast %141 : vector<1x16xf32> to vector<8x16xf32>
    %144 = arith.addf %142, %143 : vector<8x16xf32>
    %145 = vector.extract_strided_slice %144 {offsets = [0, 0], sizes = [4, 16], strides = [1, 1]} : vector<8x16xf32> to vector<4x16xf32>
    %146 = vector.extract_strided_slice %145 {offsets = [0, 0], sizes = [4, 4], strides = [1, 1]} : vector<4x16xf32> to vector<4x4xf32>
    %147 = arith.negf %146 : vector<4x4xf32>
    %148 = math.exp %147 : vector<4x4xf32>
    %cst_44 = arith.constant 1.000000e+00 : f32
    %149 = vector.broadcast %cst_44 : f32 to vector<4x4xf32>
    %150 = arith.addf %149, %148 : vector<4x4xf32>
    %151 = arith.divf %149, %150 : vector<4x4xf32>
    %152 = vector.extract_strided_slice %145 {offsets = [0, 8], sizes = [4, 4], strides = [1, 1]} : vector<4x16xf32> to vector<4x4xf32>
    %153 = math.tanh %152 : vector<4x4xf32>
    %154 = vector.extract_strided_slice %145 {offsets = [0, 12], sizes = [4, 4], strides = [1, 1]} : vector<4x16xf32> to vector<4x4xf32>
    %155 = arith.negf %154 : vector<4x4xf32>
    %156 = math.exp %155 : vector<4x4xf32>
    %cst_45 = arith.constant 1.000000e+00 : f32
    %157 = vector.broadcast %cst_45 : f32 to vector<4x4xf32>
    %158 = arith.addf %157, %156 : vector<4x4xf32>
    %159 = arith.divf %157, %158 : vector<4x4xf32>
    %160 = arith.mulf %151, %153 : vector<4x4xf32>
    %161 = math.tanh %160 : vector<4x4xf32>
    %162 = arith.mulf %159, %161 : vector<4x4xf32>
    %163 = vector.extract_strided_slice %144 {offsets = [4, 0], sizes = [4, 16], strides = [1, 1]} : vector<8x16xf32> to vector<4x16xf32>
    %cst_46 = arith.constant dense<0.000000e+00> : vector<4x16xf32>
    %164 = tpu.matmul %162, %140, %cst_46 {dimension_numbers = #tpu.dot_dimension_numbers<[1], [0], [0], [1], [0, 0, 1, 1], [], []>} : vector<4x4xf32>, vector<4x16xf32>, vector<4x16xf32> -> vector<4x16xf32>
    %165 = arith.addf %163, %164 : vector<4x16xf32>
    %166 = vector.extract_strided_slice %165 {offsets = [0, 0], sizes = [4, 4], strides = [1, 1]} : vector<4x16xf32> to vector<4x4xf32>
    %167 = arith.negf %166 : vector<4x4xf32>
    %168 = math.exp %167 : vector<4x4xf32>
    %cst_47 = arith.constant 1.000000e+00 : f32
    %169 = vector.broadcast %cst_47 : f32 to vector<4x4xf32>
    %170 = arith.addf %169, %168 : vector<4x4xf32>
    %171 = arith.divf %169, %170 : vector<4x4xf32>
    %172 = vector.extract_strided_slice %165 {offsets = [0, 4], sizes = [4, 4], strides = [1, 1]} : vector<4x16xf32> to vector<4x4xf32>
    %173 = arith.negf %172 : vector<4x4xf32>
    %174 = math.exp %173 : vector<4x4xf32>
    %cst_48 = arith.constant 1.000000e+00 : f32
    %175 = vector.broadcast %cst_48 : f32 to vector<4x4xf32>
    %176 = arith.addf %175, %174 : vector<4x4xf32>
    %177 = arith.divf %175, %176 : vector<4x4xf32>
    %178 = vector.extract_strided_slice %165 {offsets = [0, 8], sizes = [4, 4], strides = [1, 1]} : vector<4x16xf32> to vector<4x4xf32>
    %179 = math.tanh %178 : vector<4x4xf32>
    %180 = vector.extract_strided_slice %165 {offsets = [0, 12], sizes = [4, 4], strides = [1, 1]} : vector<4x16xf32> to vector<4x4xf32>
    %181 = arith.negf %180 : vector<4x4xf32>
    %182 = math.exp %181 : vector<4x4xf32>
    %cst_49 = arith.constant 1.000000e+00 : f32
    %183 = vector.broadcast %cst_49 : f32 to vector<4x4xf32>
    %184 = arith.addf %183, %182 : vector<4x4xf32>
    %185 = arith.divf %183, %184 : vector<4x4xf32>
    %186 = arith.mulf %177, %160 : vector<4x4xf32>
    %187 = arith.mulf %171, %179 : vector<4x4xf32>
    %188 = arith.addf %186, %187 : vector<4x4xf32>
    %189 = math.tanh %188 : vector<4x4xf32>
    %190 = arith.mulf %185, %189 : vector<4x4xf32>
    %c0_50 = arith.constant 0 : index
    %c0_51 = arith.constant 0 : index
    %191 = vector.load %arg1[%c0_50, %c0_51] : memref<16x6xf32, #tpu.memory_space<vmem>>, vector<16x6xf32>
    %c0_52 = arith.constant 0 : index
    %c0_53 = arith.constant 0 : index
    %192 = vector.load %arg15[%c0_52, %c0_53] : memref<6x16xf32, #tpu.memory_space<vmem>>, vector<6x16xf32>
    %c0_54 = arith.constant 0 : index
    %c0_55 = arith.constant 0 : index
    %193 = vector.load %arg16[%c0_54, %c0_55] : memref<4x16xf32, #tpu.memory_space<vmem>>, vector<4x16xf32>
    %c0_56 = arith.constant 0 : index
    %c0_57 = arith.constant 0 : index
    %194 = vector.load %arg17[%c0_56, %c0_57] : memref<1x16xf32, #tpu.memory_space<vmem>>, vector<1x16xf32>
    %cst_58 = arith.constant dense<0.000000e+00> : vector<16x16xf32>
    %195 = tpu.matmul %191, %192, %cst_58 {dimension_numbers = #tpu.dot_dimension_numbers<[1], [0], [0], [1], [0, 0, 1, 1], [], []>} : vector<16x6xf32>, vector<6x16xf32>, vector<16x16xf32> -> vector<16x16xf32>
    %196 = vector.broadcast %194 : vector<1x16xf32> to vector<16x16xf32>
    %197 = arith.addf %195, %196 : vector<16x16xf32>
    %198 = vector.extract_strided_slice %197 {offsets = [0, 0], sizes = [4, 16], strides = [1, 1]} : vector<16x16xf32> to vector<4x16xf32>
    %199 = vector.extract_strided_slice %198 {offsets = [0, 0], sizes = [4, 4], strides = [1, 1]} : vector<4x16xf32> to vector<4x4xf32>
    %200 = arith.negf %199 : vector<4x4xf32>
    %201 = math.exp %200 : vector<4x4xf32>
    %cst_59 = arith.constant 1.000000e+00 : f32
    %202 = vector.broadcast %cst_59 : f32 to vector<4x4xf32>
    %203 = arith.addf %202, %201 : vector<4x4xf32>
    %204 = arith.divf %202, %203 : vector<4x4xf32>
    %205 = vector.extract_strided_slice %198 {offsets = [0, 8], sizes = [4, 4], strides = [1, 1]} : vector<4x16xf32> to vector<4x4xf32>
    %206 = math.tanh %205 : vector<4x4xf32>
    %207 = vector.extract_strided_slice %198 {offsets = [0, 12], sizes = [4, 4], strides = [1, 1]} : vector<4x16xf32> to vector<4x4xf32>
    %208 = arith.negf %207 : vector<4x4xf32>
    %209 = math.exp %208 : vector<4x4xf32>
    %cst_60 = arith.constant 1.000000e+00 : f32
    %210 = vector.broadcast %cst_60 : f32 to vector<4x4xf32>
    %211 = arith.addf %210, %209 : vector<4x4xf32>
    %212 = arith.divf %210, %211 : vector<4x4xf32>
    %213 = arith.mulf %204, %206 : vector<4x4xf32>
    %214 = math.tanh %213 : vector<4x4xf32>
    %215 = arith.mulf %212, %214 : vector<4x4xf32>
    %216 = vector.extract_strided_slice %197 {offsets = [4, 0], sizes = [4, 16], strides = [1, 1]} : vector<16x16xf32> to vector<4x16xf32>
    %cst_61 = arith.constant dense<0.000000e+00> : vector<4x16xf32>
    %217 = tpu.matmul %215, %193, %cst_61 {dimension_numbers = #tpu.dot_dimension_numbers<[1], [0], [0], [1], [0, 0, 1, 1], [], []>} : vector<4x4xf32>, vector<4x16xf32>, vector<4x16xf32> -> vector<4x16xf32>
    %218 = arith.addf %216, %217 : vector<4x16xf32>
    %219 = vector.extract_strided_slice %218 {offsets = [0, 0], sizes = [4, 4], strides = [1, 1]} : vector<4x16xf32> to vector<4x4xf32>
    %220 = arith.negf %219 : vector<4x4xf32>
    %221 = math.exp %220 : vector<4x4xf32>
    %cst_62 = arith.constant 1.000000e+00 : f32
    %222 = vector.broadcast %cst_62 : f32 to vector<4x4xf32>
    %223 = arith.addf %222, %221 : vector<4x4xf32>
    %224 = arith.divf %222, %223 : vector<4x4xf32>
    %225 = vector.extract_strided_slice %218 {offsets = [0, 4], sizes = [4, 4], strides = [1, 1]} : vector<4x16xf32> to vector<4x4xf32>
    %226 = arith.negf %225 : vector<4x4xf32>
    %227 = math.exp %226 : vector<4x4xf32>
    %cst_63 = arith.constant 1.000000e+00 : f32
    %228 = vector.broadcast %cst_63 : f32 to vector<4x4xf32>
    %229 = arith.addf %228, %227 : vector<4x4xf32>
    %230 = arith.divf %228, %229 : vector<4x4xf32>
    %231 = vector.extract_strided_slice %218 {offsets = [0, 8], sizes = [4, 4], strides = [1, 1]} : vector<4x16xf32> to vector<4x4xf32>
    %232 = math.tanh %231 : vector<4x4xf32>
    %233 = vector.extract_strided_slice %218 {offsets = [0, 12], sizes = [4, 4], strides = [1, 1]} : vector<4x16xf32> to vector<4x4xf32>
    %234 = arith.negf %233 : vector<4x4xf32>
    %235 = math.exp %234 : vector<4x4xf32>
    %cst_64 = arith.constant 1.000000e+00 : f32
    %236 = vector.broadcast %cst_64 : f32 to vector<4x4xf32>
    %237 = arith.addf %236, %235 : vector<4x4xf32>
    %238 = arith.divf %236, %237 : vector<4x4xf32>
    %239 = arith.mulf %230, %213 : vector<4x4xf32>
    %240 = arith.mulf %224, %232 : vector<4x4xf32>
    %241 = arith.addf %239, %240 : vector<4x4xf32>
    %242 = math.tanh %241 : vector<4x4xf32>
    %243 = arith.mulf %238, %242 : vector<4x4xf32>
    %244 = vector.extract_strided_slice %197 {offsets = [8, 0], sizes = [4, 16], strides = [1, 1]} : vector<16x16xf32> to vector<4x16xf32>
    %cst_65 = arith.constant dense<0.000000e+00> : vector<4x16xf32>
    %245 = tpu.matmul %243, %193, %cst_65 {dimension_numbers = #tpu.dot_dimension_numbers<[1], [0], [0], [1], [0, 0, 1, 1], [], []>} : vector<4x4xf32>, vector<4x16xf32>, vector<4x16xf32> -> vector<4x16xf32>
    %246 = arith.addf %244, %245 : vector<4x16xf32>
    %247 = vector.extract_strided_slice %246 {offsets = [0, 0], sizes = [4, 4], strides = [1, 1]} : vector<4x16xf32> to vector<4x4xf32>
    %248 = arith.negf %247 : vector<4x4xf32>
    %249 = math.exp %248 : vector<4x4xf32>
    %cst_66 = arith.constant 1.000000e+00 : f32
    %250 = vector.broadcast %cst_66 : f32 to vector<4x4xf32>
    %251 = arith.addf %250, %249 : vector<4x4xf32>
    %252 = arith.divf %250, %251 : vector<4x4xf32>
    %253 = vector.extract_strided_slice %246 {offsets = [0, 4], sizes = [4, 4], strides = [1, 1]} : vector<4x16xf32> to vector<4x4xf32>
    %254 = arith.negf %253 : vector<4x4xf32>
    %255 = math.exp %254 : vector<4x4xf32>
    %cst_67 = arith.constant 1.000000e+00 : f32
    %256 = vector.broadcast %cst_67 : f32 to vector<4x4xf32>
    %257 = arith.addf %256, %255 : vector<4x4xf32>
    %258 = arith.divf %256, %257 : vector<4x4xf32>
    %259 = vector.extract_strided_slice %246 {offsets = [0, 8], sizes = [4, 4], strides = [1, 1]} : vector<4x16xf32> to vector<4x4xf32>
    %260 = math.tanh %259 : vector<4x4xf32>
    %261 = vector.extract_strided_slice %246 {offsets = [0, 12], sizes = [4, 4], strides = [1, 1]} : vector<4x16xf32> to vector<4x4xf32>
    %262 = arith.negf %261 : vector<4x4xf32>
    %263 = math.exp %262 : vector<4x4xf32>
    %cst_68 = arith.constant 1.000000e+00 : f32
    %264 = vector.broadcast %cst_68 : f32 to vector<4x4xf32>
    %265 = arith.addf %264, %263 : vector<4x4xf32>
    %266 = arith.divf %264, %265 : vector<4x4xf32>
    %267 = arith.mulf %258, %241 : vector<4x4xf32>
    %268 = arith.mulf %252, %260 : vector<4x4xf32>
    %269 = arith.addf %267, %268 : vector<4x4xf32>
    %270 = math.tanh %269 : vector<4x4xf32>
    %271 = arith.mulf %266, %270 : vector<4x4xf32>
    %272 = vector.extract_strided_slice %197 {offsets = [12, 0], sizes = [4, 16], strides = [1, 1]} : vector<16x16xf32> to vector<4x16xf32>
    %cst_69 = arith.constant dense<0.000000e+00> : vector<4x16xf32>
    %273 = tpu.matmul %271, %193, %cst_69 {dimension_numbers = #tpu.dot_dimension_numbers<[1], [0], [0], [1], [0, 0, 1, 1], [], []>} : vector<4x4xf32>, vector<4x16xf32>, vector<4x16xf32> -> vector<4x16xf32>
    %274 = arith.addf %272, %273 : vector<4x16xf32>
    %275 = vector.extract_strided_slice %274 {offsets = [0, 0], sizes = [4, 4], strides = [1, 1]} : vector<4x16xf32> to vector<4x4xf32>
    %276 = arith.negf %275 : vector<4x4xf32>
    %277 = math.exp %276 : vector<4x4xf32>
    %cst_70 = arith.constant 1.000000e+00 : f32
    %278 = vector.broadcast %cst_70 : f32 to vector<4x4xf32>
    %279 = arith.addf %278, %277 : vector<4x4xf32>
    %280 = arith.divf %278, %279 : vector<4x4xf32>
    %281 = vector.extract_strided_slice %274 {offsets = [0, 4], sizes = [4, 4], strides = [1, 1]} : vector<4x16xf32> to vector<4x4xf32>
    %282 = arith.negf %281 : vector<4x4xf32>
    %283 = math.exp %282 : vector<4x4xf32>
    %cst_71 = arith.constant 1.000000e+00 : f32
    %284 = vector.broadcast %cst_71 : f32 to vector<4x4xf32>
    %285 = arith.addf %284, %283 : vector<4x4xf32>
    %286 = arith.divf %284, %285 : vector<4x4xf32>
    %287 = vector.extract_strided_slice %274 {offsets = [0, 8], sizes = [4, 4], strides = [1, 1]} : vector<4x16xf32> to vector<4x4xf32>
    %288 = math.tanh %287 : vector<4x4xf32>
    %289 = vector.extract_strided_slice %274 {offsets = [0, 12], sizes = [4, 4], strides = [1, 1]} : vector<4x16xf32> to vector<4x4xf32>
    %290 = arith.negf %289 : vector<4x4xf32>
    %291 = math.exp %290 : vector<4x4xf32>
    %cst_72 = arith.constant 1.000000e+00 : f32
    %292 = vector.broadcast %cst_72 : f32 to vector<4x4xf32>
    %293 = arith.addf %292, %291 : vector<4x4xf32>
    %294 = arith.divf %292, %293 : vector<4x4xf32>
    %295 = arith.mulf %286, %269 : vector<4x4xf32>
    %296 = arith.mulf %280, %288 : vector<4x4xf32>
    %297 = arith.addf %295, %296 : vector<4x4xf32>
    %298 = math.tanh %297 : vector<4x4xf32>
    %299 = arith.mulf %294, %298 : vector<4x4xf32>
    %300 = vector.extract_strided_slice %162 {offsets = [0, 0], sizes = [4, 1], strides = [1, 1]} : vector<4x4xf32> to vector<4x1xf32>
    %301 = vector.broadcast %300 : vector<4x1xf32> to vector<4x4xf32>
    %302 = arith.mulf %301, %215 : vector<4x4xf32>
    %303 = vector.extract_strided_slice %162 {offsets = [0, 1], sizes = [4, 1], strides = [1, 1]} : vector<4x4xf32> to vector<4x1xf32>
    %304 = vector.broadcast %303 : vector<4x1xf32> to vector<4x4xf32>
    %305 = arith.mulf %304, %243 : vector<4x4xf32>
    %306 = arith.addf %302, %305 : vector<4x4xf32>
    %307 = vector.extract_strided_slice %162 {offsets = [0, 2], sizes = [4, 1], strides = [1, 1]} : vector<4x4xf32> to vector<4x1xf32>
    %308 = vector.broadcast %307 : vector<4x1xf32> to vector<4x4xf32>
    %309 = arith.mulf %308, %271 : vector<4x4xf32>
    %310 = arith.addf %306, %309 : vector<4x4xf32>
    %311 = vector.extract_strided_slice %162 {offsets = [0, 3], sizes = [4, 1], strides = [1, 1]} : vector<4x4xf32> to vector<4x1xf32>
    %312 = vector.broadcast %311 : vector<4x1xf32> to vector<4x4xf32>
    %313 = arith.mulf %312, %299 : vector<4x4xf32>
    %314 = arith.addf %310, %313 : vector<4x4xf32>
    %315 = vector.extract_strided_slice %190 {offsets = [0, 0], sizes = [4, 1], strides = [1, 1]} : vector<4x4xf32> to vector<4x1xf32>
    %316 = vector.broadcast %315 : vector<4x1xf32> to vector<4x4xf32>
    %317 = arith.mulf %316, %215 : vector<4x4xf32>
    %318 = vector.extract_strided_slice %190 {offsets = [0, 1], sizes = [4, 1], strides = [1, 1]} : vector<4x4xf32> to vector<4x1xf32>
    %319 = vector.broadcast %318 : vector<4x1xf32> to vector<4x4xf32>
    %320 = arith.mulf %319, %243 : vector<4x4xf32>
    %321 = arith.addf %317, %320 : vector<4x4xf32>
    %322 = vector.extract_strided_slice %190 {offsets = [0, 2], sizes = [4, 1], strides = [1, 1]} : vector<4x4xf32> to vector<4x1xf32>
    %323 = vector.broadcast %322 : vector<4x1xf32> to vector<4x4xf32>
    %324 = arith.mulf %323, %271 : vector<4x4xf32>
    %325 = arith.addf %321, %324 : vector<4x4xf32>
    %326 = vector.extract_strided_slice %190 {offsets = [0, 3], sizes = [4, 1], strides = [1, 1]} : vector<4x4xf32> to vector<4x1xf32>
    %327 = vector.broadcast %326 : vector<4x1xf32> to vector<4x4xf32>
    %328 = arith.mulf %327, %299 : vector<4x4xf32>
    %329 = arith.addf %325, %328 : vector<4x4xf32>
    %330 = vector.shape_cast %314 : vector<4x4xf32> to vector<4x1x4xf32>
    %331 = vector.shape_cast %329 : vector<4x4xf32> to vector<4x1x4xf32>
    %332 = tpu.concatenate %330, %331 in 1 : vector<4x1x4xf32>, vector<4x1x4xf32> -> vector<4x2x4xf32>
    %c0_73 = arith.constant 0 : index
    %c0_74 = arith.constant 0 : index
    %c0_75 = arith.constant 0 : index
    %333 = vector.load %arg18[%c0_73, %c0_74, %c0_75] : memref<4x2x4xf32, #tpu.memory_space<vmem>>, vector<4x2x4xf32>
    tpu.vector_store %arg18[%c0_73, %c0_74, %c0_75], %332 {strides = array<i32>} : memref<4x2x4xf32, #tpu.memory_space<vmem>>, vector<4x2x4xf32>,
    return
  }
}

</mosaic_0001>

<bundles_post_ra>
// kernel: ca2_af_lstm_forward.1
= control target key start
LH: loop header
LB: loop body
LE: loop exit
PB: predicated region body
PF: predicated region fallthrough
CT: control target
= control target key end

     0   :  { %s2389_s0 = inlined_call_operand.vmem [shape: f32[8,8], index: 0, kind: input, shape index: {}]   ;;  %s2390_s1 = inlined_call_operand.vmem [shape: f32[16,6], index: 1, kind: input, shape index: {}]   ;;  %s2391_s2 = inlined_call_operand.hbm [shape: f32[8,128], index: 2, kind: input, shape index: {}]   ;;  %s2392_s3 = inlined_call_operand.vmem [shape: f32[32,128], index: 3, kind: input, shape index: {}]   ;;  %s2393_s4 = inlined_call_operand.hbm [shape: f32[1,128], index: 4, kind: input, shape index: {}]   ;;  %s2394_s5 = inlined_call_operand.hbm [shape: f32[2], index: 5, kind: input, shape index: {}]   ;;  %s2395_s6 = inlined_call_operand.hbm [shape: f32[2], index: 6, kind: input, shape index: {}]   ;;  %s2396_s7 = inlined_call_operand.vmem [shape: f32[32,64], index: 7, kind: input, shape index: {}]   ;;  %s2397_s8 = inlined_call_operand.vmem [shape: f32[16,64], index: 8, kind: input, shape index: {}]   ;;  %s2398_s9 = inlined_call_operand.hbm [shape: f32[1,64], index: 9, kind: input, shape index: {}]   ;;  %s2399_s10 = inlined_call_operand.hbm [shape: f32[2], index: 10, kind: input, shape index: {}]   ;;  %s2400_s11 = inlined_call_operand.hbm [shape: f32[2], index: 11, kind: input, shape index: {}]   ;;  %s2401_s12 = inlined_call_operand.hbm [shape: f32[16,16], index: 12, kind: input, shape index: {}]   ;;  %s2402_s13 = inlined_call_operand.hbm [shape: f32[4,16], index: 13, kind: input, shape index: {}]   ;;  %s2403_s14 = inlined_call_operand.hbm [shape: f32[1,16], index: 14, kind: input, shape index: {}]   ;;  %s2404_s15 = inlined_call_operand.hbm [shape: f32[6,16], index: 15, kind: input, shape index: {}]   ;;  %s2405_s16 = inlined_call_operand.hbm [shape: f32[4,16], index: 16, kind: input, shape index: {}]   ;;  %s2406_s17 = inlined_call_operand.hbm [shape: f32[1,16], index: 17, kind: input, shape index: {}]   ;;  %s2407_s18 = inlined_call_operand.hbm [shape: f32[4,2,4], index: 18, kind: output, shape index: {}]  }
   0x1   :  { %2409 = sst [smem:[#allocation36_spill]] %s2389_s0 }
   0x2   :  { %2410 = sst [smem:[#allocation37_spill]] %s2390_s1 }
   0x3   :  { %2411 = sst [smem:[#allocation38_spill]] %s2391_s2 }
   0x4   :  { %23 = vsyncpa [#allocation3], 0 }
   0x5   :  { %24 = vsyncpa [#allocation7], 0 }
   0x6   :  { %25 = vsyncpa [#allocation5], 0 }
   0x7   :  { %26 = vsyncpa [#allocation10], 0 }
   0x8   :  { %27 = vsyncpa [#allocation14], 0 }
   0x9   :  { %28 = vsyncpa [#allocation16], 0 }
   0xa   :  { %29 = vsyncpa [#allocation19], 0 }
   0xb   :  { %30 = vsyncpa [#allocation22], 0 }
   0xc   :  { %31 = vsyncpa [#allocation4], 0  ;;  %s2033_s27 = smov [#allocation6]   ;;  %s2034_s29 = smov [#allocation15]  }
   0xd   :  { %s54_s28 = sshll.u32 %s2033_s27, 4  ;;  %s109_s30 = sshll.u32 %s2034_s29, 4  ;;  %s55_s28 = int_to_ptr.vmem [resolvable:$true] %s54_s28  ;;  %s110_s30 = int_to_ptr.vmem [resolvable:$true] %s109_s30 }
   0xe   :  { %s1787_s0 = scalar_lea.vmem %s55_s28, 16  ;;  %s1791_s19 = scalar_lea.vmem %s55_s28, 32 }
   0xf   :  { %p1788_p0 = scmp.ne.s32.totalorder %s55_s28, %s1787_s0  ;;  %p1792_p1 = scmp.lt.s32.totalorder %s55_s28, %s55_s28 }
  0x10   :  { %p1793_p2 = scmp.lt.s32.totalorder %s1791_s19, %s1787_s0 }
  0x12   :  { %p1794_p3 = por %p1793_p2, %p1792_p1 }
  0x14   :  { %p1795_p4 = pnand %p1794_p3, %p1788_p0 }
  0x16   :  { %1798 = shalt.err (!%p1795_p4)
}
  0x17   :  { %57 = dma.hbm_to_vmem [thread:$0]  %s2393_s4, 16, %s55_s28, [#allocation7]  }
  0x18   :  { %s2035_s21 = smov [#allocation9]   ;;  %s1815_s23 = scalar_lea.vmem %s110_s30, 256 }
  0x19   :  { %73 = dma.hbm_to_smem %s2395_s6, 16, %s2035_s21, [#allocation10]  }
  0x1a   :  { %p1816_p5 = scmp.ne.s32.totalorder %s110_s30, %s1815_s23  ;;  %p1820_p6 = scmp.lt.s32.totalorder %s110_s30, %s110_s30 }
  0x1b   :  { %p1821_p7 = scmp.lt.s32.totalorder %s1815_s23, %s1815_s23 }
  0x1d   :  { %p1822_p8 = por %p1821_p7, %p1820_p6 }
  0x1f   :  { %p1823_p9 = pnand %p1822_p8, %p1816_p5 }
  0x21   :  { %1826 = shalt.err (!%p1823_p9)
}
  0x22   :  { %s2036_s24 = smov 128   ;;  %s2037_s25 = smov 8  }
  0x23   :  { %115 = dma.hbm_to_vmem [thread:$0]  %s2401_s12, 256, %s110_s30, [#allocation16], %s2036_s24, %s2036_s24, %s2037_s25  }
  0x24   :  { %s2038_s4 = smov [#allocation18]   ;;  %s2039_s29 = smov [#allocation21]  }
  0x25   :  { %s132_s28 = sshll.u32 %s2038_s4, 4  ;;  %s152_s6 = sshll.u32 %s2039_s29, 4  ;;  %s133_s28 = int_to_ptr.vmem [resolvable:$true] %s132_s28  ;;  %s153_s6 = int_to_ptr.vmem [resolvable:$true] %s152_s6 }
  0x26   :  { %s1835_s0 = scalar_lea.vmem %s133_s28, 16  ;;  %s1839_s19 = scalar_lea.vmem %s133_s28, 32 }
  0x27   :  { %p1836_p10 = scmp.ne.s32.totalorder %s133_s28, %s1835_s0  ;;  %p1840_p11 = scmp.lt.s32.totalorder %s133_s28, %s133_s28 }
  0x28   :  { %p1841_p12 = scmp.lt.s32.totalorder %s1839_s19, %s1835_s0 }
  0x2a   :  { %p1842_p13 = por %p1841_p12, %p1840_p11 }
  0x2c   :  { %p1843_p0 = pnand %p1842_p13, %p1836_p10 }
  0x2e   :  { %1846 = shalt.err (!%p1843_p0)
}
  0x2f   :  { %135 = dma.hbm_to_vmem [thread:$0]  %s2403_s14, 16, %s133_s28, [#allocation19]  }
  0x30   :  { %s1855_s21 = scalar_lea.vmem %s153_s6, 64  ;;  %p1860_p2 = scmp.lt.s32.totalorder %s153_s6, %s153_s6 }
  0x31   :  { %p1856_p1 = scmp.ne.s32.totalorder %s153_s6, %s1855_s21  ;;  %p1861_p3 = scmp.lt.s32.totalorder %s1855_s21, %s1855_s21 }
  0x33   :  { %p1862_p4 = por %p1861_p3, %p1860_p2 }
  0x35   :  { %p1863_p5 = pnand %p1862_p4, %p1856_p1 }
  0x37   :  { %1866 = shalt.err (!%p1863_p5)
}
  0x38   :  { %155 = dma.hbm_to_vmem [thread:$0]  %s2405_s16, 64, %s153_s6, [#allocation22]  }
  0x39   :  { %s2040_s22 = smov [#allocation2]  }
  0x3a   :  { %s42_s2 = sshll.u32 %s2040_s22, 4  ;;  %s43_s2 = int_to_ptr.vmem [resolvable:$true] %s42_s2 }
  0x3b   :  { %s1875_s23 = scalar_lea.vmem %s43_s2, 128  ;;  %p1880_p7 = scmp.lt.s32.totalorder %s43_s2, %s43_s2 }
  0x3c   :  { %p1876_p6 = scmp.ne.s32.totalorder %s43_s2, %s1875_s23  ;;  %p1881_p8 = scmp.lt.s32.totalorder %s1875_s23, %s1875_s23 }
  0x3e   :  { %p1882_p9 = por %p1881_p8, %p1880_p7 }
  0x40   :  { %p1883_p10 = pnand %p1882_p9, %p1876_p6 }
  0x42   :  { %1886 = shalt.err (!%p1883_p10)
}
  0x43   :  { %s2412_s26 = sld [smem:[#allocation38_spill]]  ;;  %s2041_s27 = smov [#allocation8]  }
  0x44   :  { %65 = dma.hbm_to_smem %s2394_s5, 16, %s2041_s27, [#allocation5]  }
  0x45   :  { %s2042_s16 = smov [#allocation11]  }
  0x46   :  { %s84_s29 = sshll.u32 %s2042_s16, 4  ;;  %s85_s29 = int_to_ptr.vmem [resolvable:$true] %s84_s29 }
  0x47   :  { %s1903_s6 = scalar_lea.vmem %s85_s29, 16  ;;  %s1907_s0 = scalar_lea.vmem %s85_s29, 32 }
  0x48   :  { %p1904_p11 = scmp.ne.s32.totalorder %s85_s29, %s1903_s6  ;;  %p1908_p12 = scmp.lt.s32.totalorder %s85_s29, %s85_s29 }
  0x49   :  { %45 = dma.hbm_to_vmem [thread:$0]  %s2412_s26, 128, %s43_s2, [#allocation3]  }
  0x4a   :  { %p1909_p13 = scmp.lt.s32.totalorder %s1907_s0, %s1903_s6 }
  0x4c   :  { %p1910_p0 = por %p1909_p13, %p1908_p12 }
  0x4e   :  { %p1911_p1 = pnand %p1910_p0, %p1904_p11 }
  0x50   :  { %1914 = shalt.err (!%p1911_p1)
}
  0x51   :  { %87 = dma.hbm_to_vmem [thread:$0]  %s2398_s9, 16, %s85_s29, [#allocation7]  }
  0x52   :  { %s2043_s20 = smov [#allocation12]   ;;  %s2044_s5 = smov [#allocation13]  }
  0x53   :  { %95 = dma.hbm_to_smem %s2399_s10, 16, %s2043_s20, [#allocation10]  }
  0x54   :  { %103 = dma.hbm_to_smem %s2400_s11, 16, %s2044_s5, [#allocation14]  }
  0x55   :  { %s2045_s2 = smov [#allocation17]   ;;  %s2046_s14 = smov [#allocation20]  }
  0x56   :  { %s122_s23 = sshll.u32 %s2045_s2, 4  ;;  %s142_s24 = sshll.u32 %s2046_s14, 4  ;;  %s123_s23 = int_to_ptr.vmem [resolvable:$true] %s122_s23  ;;  %s143_s24 = int_to_ptr.vmem [resolvable:$true] %s142_s24 }
  0x57   :  { %s1939_s26 = scalar_lea.vmem %s123_s23, 64  ;;  %p1944_p3 = scmp.lt.s32.totalorder %s123_s23, %s123_s23 }
  0x58   :  { %p1940_p2 = scmp.ne.s32.totalorder %s123_s23, %s1939_s26  ;;  %p1945_p4 = scmp.lt.s32.totalorder %s1939_s26, %s1939_s26 }
  0x5a   :  { %p1946_p5 = por %p1945_p4, %p1944_p3 }
  0x5c   :  { %p1947_p6 = pnand %p1946_p5, %p1940_p2 }
  0x5e   :  { %1950 = shalt.err (!%p1947_p6)
}
  0x5f   :  { %125 = dma.hbm_to_vmem [thread:$0]  %s2402_s13, 64, %s123_s23, [#allocation16]  }
  0x60   :  { %s1959_s27 = scalar_lea.vmem %s143_s24, 128  ;;  %p1964_p8 = scmp.lt.s32.totalorder %s143_s24, %s143_s24 }
  0x61   :  { %p1960_p7 = scmp.ne.s32.totalorder %s143_s24, %s1959_s27  ;;  %p1965_p9 = scmp.lt.s32.totalorder %s1959_s27, %s1959_s27 }
  0x63   :  { %p1966_p10 = por %p1965_p9, %p1964_p8 }
  0x65   :  { %p1967_p11 = pnand %p1966_p10, %p1960_p7 }
  0x67   :  { %1970 = shalt.err (!%p1967_p11)
}
  0x68   :  { %145 = dma.hbm_to_vmem [thread:$0]  %s2404_s15, 128, %s143_s24, [#allocation19]  }
  0x69   :  { %s2047_s28 = smov [#allocation23]  }
  0x6a   :  { %s162_s16 = sshll.u32 %s2047_s28, 4  ;;  %s163_s16 = int_to_ptr.vmem [resolvable:$true] %s162_s16 }
  0x6b   :  { %s1979_s29 = scalar_lea.vmem %s163_s16, 16  ;;  %s1983_s6 = scalar_lea.vmem %s163_s16, 32 }
  0x6c   :  { %p1980_p12 = scmp.ne.s32.totalorder %s163_s16, %s1979_s29  ;;  %p1984_p13 = scmp.lt.s32.totalorder %s163_s16, %s163_s16 }
  0x6d   :  { %p1985_p0 = scmp.lt.s32.totalorder %s1983_s6, %s1979_s29 }
  0x6f   :  { %p1986_p1 = por %p1985_p0, %p1984_p13 }
  0x71   :  { %p1987_p2 = pnand %p1986_p1, %p1980_p12 }
  0x73   :  { %1990 = shalt.err (!%p1987_p2)
}
  0x74   :  { %165 = dma.hbm_to_vmem [thread:$0]  %s2406_s17, 16, %s163_s16, [#allocation22]  }
  0x75   :  { %2011 = dma.done.wait [#allocation3], 128  }
  0x76   :  { %2012 = vsyncadd [#allocation3], 4294967168 }
  0x77   :  { %2013 = dma.done.wait [#allocation7], 16  }
  0x78   :  { %2014 = vsyncadd [#allocation7], 4294967280 }
  0x79   :  { %2015 = dma.done.wait [#allocation5], 16  }
  0x7a   :  { %2016 = vsyncadd [#allocation5], 4294967280 }
  0x7b   :  { %2017 = dma.done.wait [#allocation10], 16  }
  0x7c   :  { %2018 = vsyncadd [#allocation10], 4294967280 }
  0x7d   :  { %2019 = dma.done.wait [#allocation7], 16  }
  0x7e   :  { %2020 = vsyncadd [#allocation7], 4294967280 }
  0x7f   :  { %2021 = dma.done.wait [#allocation10], 16  }
  0x80   :  { %2022 = vsyncadd [#allocation10], 4294967280 }
  0x81   :  { %2023 = dma.done.wait [#allocation14], 16  }
  0x82   :  { %2024 = vsyncadd [#allocation14], 4294967280 }
  0x83   :  { %2025 = dma.done.wait [#allocation16], 320  }
  0x84   :  { %2026 = vsyncadd [#allocation16], 4294966976 }
  0x85   :  { %2027 = dma.done.wait [#allocation19], 144  }
  0x86   :  { %2028 = vsyncadd [#allocation19], 4294967152 }
  0x87   :  { %2029 = dma.done.wait [#allocation22], 80  }
  0x88   :  { %2030 = vsyncadd [#allocation22], 4294967216 }
  0x89   :  { %205 = sfence }
  0x8a   :  { %v207_v0 = vld [vmem:[#allocation2] sm:$0xff]  ;;  %s2413_s19 = sld [smem:[#allocation36_spill]]  ;;  %vm219_vm0 = vcmask 64512   ;;  %v2048_v2 = vmov 0.0   ;;  %vm2049_vm1 = vmmov 0   ;;  %s2050_s1 = smov 64  }
  0x8b   :  { %1590 = vmatprep.subr.mxu0 %v2048_v2  ;;  %1592 = vmatprep.mubr.msk.f32.mxu0 %vm2049_vm1, %v2048_v2  ;;  %v1527_v3 = vld [vmem:[#allocation6] ss:$0 sm:$0xff]  ;;  %v211_v14 = vld [vmem:[%s2392_s3 + $0x18] sm:$0xff]  ;;  %v210_v15 = vld [vmem:[%s2392_s3 + $0x10] sm:$0xff]  ;;  %s2051_s14 = smov 96   ;;  %s2052_s24 = smov 32  }
  0x8c   :  { %1591 = vmatpush3.msra.mxu0 %v207_v0  ;;  %1595 = vmatprep.subr.mxu1 %v2048_v2  ;;  %v209_v16 = vld [vmem:[%s2392_s3 + $0x8] sm:$0xff]  ;;  %v208_v17 = vld [vmem:[%s2392_s3] sm:$0xff]  ;;  %vm314_vm2 = vcmask 261120   ;;  %v439_v38 = vld [vmem:[%s2396_s7 + $0x18] sm:$0xff]  ;;  %s420_s16 = sld [smem:[#allocation8]]  ;;  %vm434_vm3 = vcmask 1043456  }
  0x8d   :  { %1603 = vmatprep.mubr.msk.f32.mxu1 %vm2049_vm1, %v2048_v2  ;;  %1606 = vmatprep.subr.mxu0 %v2048_v2  ;;  %v438_v39 = vld [vmem:[%s2396_s7 + $0x10] sm:$0xff]  ;;  %v437_v40 = vld [vmem:[%s2396_s7 + $0x8] sm:$0xff]  ;;  %v436_v42 = vld [vmem:[%s2396_s7] sm:$0xff]  ;;  %s423_s29 = sld [smem:[#allocation9]]  ;;  %s2055_s20 = smov 16   ;;  %vm545_vm4 = vcmask 130048  }
  0x8e   :  { %1596 = vmatpush3.msra.mxu1 %v211_v14  ;;  %s1532_s6 = sld [smem:[#allocation8 + $0x1]]  ;;  %v1534_v57 = vld [vmem:[#allocation11] ss:$0 sm:$0xff]  ;;  %vm899_vm5 = vcmask 1045504   ;;  %vm892_vm6 = vcmask 48128   ;;  %s2056_s3 = smov 120  }
  0x8f   :  { %1597 = vmatprep.subr.mxu1 %v2048_v2  ;;  %s1533_s13 = sld [smem:[#allocation9 + $0x1]]  ;;  %s2057_s26 = smov 12   ;;  %vm772_vm7 = vcmask 31744   ;;  %vm1477_vm8 = vcmask 1040384   ;;  %vm1498_vm9 = vcmask 25600  }
  0x90   :  { %v206_v1 = vld [vmem:[%s2413_s19] sm:$0xff]  ;;  %1598 = vmatpush3.msra.mxu1 %v210_v15  ;;  %s2053_s19 = smov 48   ;;  %s654_s21 = sld [smem:[#allocation13]] }
  0x91   :  { %1593 = vmatmul.mubr.msk.f32.vlgmr.msra.gmra.mxu0 %vm219_vm0, %v206_v1  ;;  %1599 = vmatprep.subr.mxu1 %v2048_v2  ;;  %s1539_s12 = sld [smem:[#allocation12 + $0x1]]  ;;  %s2058_s9 = smov 116  }
  0x92   :  { %1614 = vmatprep.mubr.msk.f32.mxu0 %vm2049_vm1, %v2048_v2  ;;  %1600 = vmatpush3.msra.mxu1 %v209_v16  ;;  %v421_v43 = vstv %s420_s16  ;;  %s1540_s5 = sld [smem:[#allocation13 + $0x1]]  ;;  %s2059_s10 = smov 4  }
  0x93   :  { %1601 = vmatprep.subr.mxu1 %v2048_v2  ;;  %1607 = vmatpush3.msra.mxu0 %v439_v38  ;;  %v424_v45 = vstv %s423_s29  ;;  %s2414_s2 = sld [smem:[#allocation37_spill]] }
  0x94   :  { %1602 = vmatpush3.msra.mxu1 %v208_v17  ;;  %1608 = vmatprep.subr.mxu0 %v2048_v2  ;;  %v428_v46 = vstv %s1532_s6 }
  0x95   :  { %1617 = vmatprep.subr.mxu1 %v2048_v2  ;;  %1609 = vmatpush3.msra.mxu0 %v438_v39  ;;  %v431_v49 = vstv %s1533_s13 }
  0x96   :  { %1610 = vmatprep.subr.mxu0 %v2048_v2 }
  0x97   :  { %1611 = vmatpush3.msra.mxu0 %v437_v40 }
  0x98   :  { %1612 = vmatprep.subr.mxu0 %v2048_v2 }
  0x99   :  { %1613 = vmatpush3.msra.mxu0 %v436_v42 }
  0x9a   :  { %1624 = vmatprep.subr.mxu0 %v2048_v2 }
 0x151   :  { %v289_v4 = vpop.f32.mrf.mxu0 }
 0x152   :  { %v290_v5 = vadd.f32 %v1527_v3, %v289_v4 }
 0x153   :  { %v1594_v6 = vpop.f32.mrf.mxu0 }
 0x154   :  { %1699 = vtanh.f32 %v290_v5  ;;  %v1529_v8 = vmul.f32 -1.442695, %v290_v5  ;;  %v440_v6 = vld [vmem:[%s2397_s8] sm:$0xff] }
 0x156   :  { %1701 = vpow2.f32 %v1529_v8 }
 0x161   :  { %v1700_v7 = vpop.eup %1699 }
 0x162   :  { %301 = vrot.lane.b32.xlu0 %v1700_v7, %s2050_s1 }
 0x163   :  { %v1702_v9 = vpop.eup %1701 }
 0x164   :  { %v296_v10 = vadd.f32 1.0, %v1702_v9 }
 0x166   :  { %1703 = vrcp.f32 %v296_v10 }
 0x173   :  { %v1704_v11 = vpop.eup %1703 }
 0x1d4   :  { %v302_v12 = vpop.permute.xlu0 %301 }
 0x1d5   :  { %v304_v13 = vmul.f32 %v1704_v11, %v302_v12 }
 0x1d7   :  { %1705 = vtanh.f32 %v304_v13  ;;  %v399_v19 = vrot.slane %v304_v13, 4 }
 0x1e4   :  { %v1706_v18 = vpop.eup %1705 }
 0x1e5   :  { %307 = vrot.lane.b32.xlu0 %v1706_v18, %s2051_s14 }
 0x1e9   :  { %400 = vrot.lane.b32.xlu0 %v399_v19, %s2052_s24 }
 0x257   :  { %v308_v20 = vpop.permute.xlu0 %307 }
 0x258   :  { %v310_v21 = vmul.f32 %v1704_v11, %v308_v20 }
 0x25a   :  { %312 = vrot.lane.b32.xlu1 %v310_v21, %s2052_s24  ;;  %v422_v44 = vmul.f32 %v421_v43, %v310_v21 }
 0x25b   :  { %v401_v34 = vpop.permute.xlu0 %400 }
 0x25c   :  { %v425_v50 = vadd.f32 %v424_v45, %v422_v44  ;;  %v881_v44 = vld [vmem:[%s2414_s2] sm:$0xff] }
 0x25e   :  { %v426_v53 = vmax.f32 %v425_v50, 0.0 }
 0x2cc   :  { %v313_v22 = vpop.permute.xlu1 %312 }
 0x2cd   :  { %1604 = vmatmul.mubr.msk.f32.vlgmr.msra.gmra.mxu1 %vm314_vm2, %v313_v22 }
 0x2ce   :  { %1621 = vmatprep.mubr.msk.f32.mxu1 %vm2049_vm1, %v2048_v2 }
 0x38d   :  { %v383_v23 = vpop.f32.mrf.mxu1 }
 0x38e   :  { %v388_v24 = vrot.slane %v383_v23, 4 }
 0x38f   :  { %v1605_v25 = vpop.f32.mrf.mxu1 }
 0x390   :  { %v390_v26 = vadd.f32 %v388_v24, %v290_v5  ;;  %v441_v5 = vld [vmem:[%s2397_s8 + $0x8] sm:$0xff]  ;;  %s651_s8 = sld [smem:[#allocation12]] }
 0x391   :  { %1618 = vmatpush3.msra.mxu1 %v441_v5 }
 0x392   :  { %1707 = vtanh.f32 %v390_v26  ;;  %v1531_v28 = vmul.f32 -1.442695, %v390_v26  ;;  %1619 = vmatprep.subr.mxu1 %v2048_v2 }
 0x393   :  { %1620 = vmatpush3.msra.mxu1 %v440_v6 }
 0x394   :  { %1709 = vpow2.f32 %v1531_v28  ;;  %1631 = vmatprep.subr.mxu1 %v2048_v2  ;;  %v666_v28 = vld [vmem:[#allocation15] sm:$0xff] }
 0x39f   :  { %v1708_v27 = vpop.eup %1707 }
 0x3a0   :  { %405 = vrot.lane.b32.xlu1 %v1708_v27, %s2050_s1  ;;  %v667_v27 = vld [vmem:[#allocation15 + $0x8] sm:$0xff] }
 0x3a1   :  { %v1710_v29 = vpop.eup %1709 }
 0x3a2   :  { %v394_v30 = vadd.f32 1.0, %v1710_v29  ;;  %v883_v29 = vld [vmem:[#allocation20] sm:$0x3f] }
 0x3a4   :  { %1711 = vrcp.f32 %v394_v30 }
 0x3b1   :  { %v1712_v31 = vpop.eup %1711 }
 0x3b2   :  { %v403_v35 = vmul.f32 %v1712_v31, %v401_v34  ;;  %v659_v34 = vstv %s1539_s12 }
 0x412   :  { %v406_v32 = vpop.permute.xlu1 %405 }
 0x413   :  { %v408_v33 = vmul.f32 %v1712_v31, %v406_v32 }
 0x415   :  { %410 = vrot.lane.b32.xlu1 %v408_v33, %s2052_s24  ;;  %v655_v33 = vstv %s654_s21 }
 0x487   :  { %v411_v36 = vpop.permute.xlu1 %410 }
 0x488   :  { %v413_v37 = vadd.f32 %v411_v36, %v403_v35 }
 0x48a   :  { %1713 = vtanh.f32 %v413_v37  ;;  %v662_v37 = vstv %s1540_s5 }
 0x497   :  { %v1714_v41 = vpop.eup %1713 }
 0x498   :  { %416 = vrot.lane.b32.xlu0 %v1714_v41, %s2050_s1  ;;  %s2054_s1 = smov 80  }
 0x50a   :  { %v417_v47 = vpop.permute.xlu0 %416 }
 0x50b   :  { %v419_v48 = vmul.f32 %v1712_v31, %v417_v47  ;;  %v652_v31 = vstv %s651_s8  ;;  %v1541_v47 = vld [vmem:[#allocation18] ss:$0 sm:$0xff] }
 0x50d   :  { %v429_v51 = vmul.f32 %v428_v46, %v419_v48  ;;  %v882_v46 = vld [vmem:[%s2414_s2 + $0x8] sm:$0xff] }
 0x50f   :  { %v432_v52 = vadd.f32 %v431_v49, %v429_v51  ;;  %v1547_v51 = vld [vmem:[#allocation23] ss:$0 sm:$0xff] }
 0x511   :  { %v433_v54 = vmax.f32 %v432_v52, 0.0 }
 0x513   :  { %v435_v55 = vsel %vm434_vm3, %v426_v53, %v433_v54 }
 0x514   :  { %450 = vrot.lane.b32.xlu1 %v435_v55, %s2052_s24 }
 0x586   :  { %v451_v56 = vpop.permute.xlu1 %450 }
 0x587   :  { %1615 = vmatmul.mubr.msk.f32.vlgmr.msra.gmra.mxu0 %vm314_vm2, %v451_v56 }
 0x588   :  { %1628 = vmatprep.mubr.msk.f32.mxu0 %vm2049_vm1, %v2048_v2  ;;  %1625 = vmatpush3.msra.mxu0 %v667_v27 }
 0x589   :  { %1626 = vmatprep.subr.mxu0 %v2048_v2 }
 0x58a   :  { %1627 = vmatpush3.msra.mxu0 %v666_v28 }
 0x58b   :  { %1636 = vmatprep.subr.msk.mxu0 %vm899_vm5, %v883_v29 }
 0x647   :  { %v520_v58 = vpop.f32.mrf.mxu0 }
 0x648   :  { %v521_v59 = vadd.f32 %v1534_v57, %v520_v58 }
 0x649   :  { %v1616_v60 = vpop.f32.mrf.mxu0 }
 0x64a   :  { %1715 = vtanh.f32 %v521_v59  ;;  %v1536_v62 = vmul.f32 -1.442695, %v521_v59 }
 0x64c   :  { %1717 = vpow2.f32 %v1536_v62 }
 0x657   :  { %v1716_v61 = vpop.eup %1715 }
 0x658   :  { %532 = vrot.lane.b32.xlu0 %v1716_v61, %s2051_s14 }
 0x659   :  { %v1718_v63 = vpop.eup %1717 }
 0x65a   :  { %v527_v0 = vadd.f32 1.0, %v1718_v63 }
 0x65c   :  { %1719 = vrcp.f32 %v527_v0 }
 0x669   :  { %v1720_v1 = vpop.eup %1719 }
 0x6ca   :  { %v533_v3 = vpop.permute.xlu0 %532 }
 0x6cb   :  { %v535_v4 = vmul.f32 %v1720_v1, %v533_v3 }
 0x6cd   :  { %1721 = vtanh.f32 %v535_v4  ;;  %v630_v10 = vrot.slane %v535_v4, 4 }
 0x6da   :  { %v1722_v7 = vpop.eup %1721 }
 0x6db   :  { %538 = vrot.lane.b32.xlu1 %v1722_v7, %s2053_s19 }
 0x74d   :  { %v539_v8 = vpop.permute.xlu1 %538 }
 0x74e   :  { %v541_v9 = vmul.f32 %v1720_v1, %v539_v8  ;;  %v668_v8 = vld [vmem:[#allocation17] sm:$0xf] }
 0x750   :  { %543 = vrot.lane.b32.xlu0 %v541_v9, %s2054_s1  ;;  %v653_v32 = vmul.f32 %v652_v31, %v541_v9 }
 0x752   :  { %v656_v38 = vadd.f32 %v655_v33, %v653_v32 }
 0x754   :  { %631 = vrot.lane.b32.xlu0 %v630_v10, %s2055_s20  ;;  %v657_v41 = vmax.f32 %v656_v38, 0.0  ;;  %v884_v10 = vld [vmem:[#allocation21] sm:$0xf] }
 0x7c2   :  { %v544_v11 = vpop.permute.xlu0 %543 }
 0x7c3   :  { %1622 = vmatmul.mubr.msk.f32.vlgmr.msra.gmra.mxu1 %vm545_vm4, %v544_v11 }
 0x7c4   :  { %1633 = vmatprep.mubr.msk.f32.mxu1 %vm2049_vm1, %v2048_v2  ;;  %1632 = vmatpush3.msk.msra.mxu1 %vm434_vm3, %v668_v8 }
 0x7c5   :  { %1641 = vmatprep.subr.mxu1 %v2048_v2 }
 0x7c6   :  { %v632_v23 = vpop.permute.xlu0 %631 }
 0x883   :  { %v614_v12 = vpop.f32.mrf.mxu1 }
 0x884   :  { %v619_v13 = vrot.slane %v614_v12, 4 }
 0x885   :  { %v1623_v14 = vpop.f32.mrf.mxu1 }
 0x886   :  { %v621_v15 = vadd.f32 %v619_v13, %v521_v59 }
 0x888   :  { %1723 = vtanh.f32 %v621_v15  ;;  %v1538_v17 = vmul.f32 -1.442695, %v621_v15 }
 0x88a   :  { %1725 = vpow2.f32 %v1538_v17 }
 0x895   :  { %v1724_v16 = vpop.eup %1723 }
 0x896   :  { %636 = vrot.lane.b32.xlu1 %v1724_v16, %s2051_s14 }
 0x897   :  { %v1726_v18 = vpop.eup %1725 }
 0x898   :  { %v625_v19 = vadd.f32 1.0, %v1726_v18 }
 0x89a   :  { %1727 = vrcp.f32 %v625_v19 }
 0x8a7   :  { %v1728_v20 = vpop.eup %1727 }
 0x8a8   :  { %v634_v24 = vmul.f32 %v1728_v20, %v632_v23 }
 0x908   :  { %v637_v21 = vpop.permute.xlu1 %636 }
 0x909   :  { %v639_v22 = vmul.f32 %v1728_v20, %v637_v21 }
 0x90b   :  { %641 = vrot.lane.b32.xlu1 %v639_v22, %s2055_s20 }
 0x97d   :  { %v642_v25 = vpop.permute.xlu1 %641 }
 0x97e   :  { %v644_v26 = vadd.f32 %v642_v25, %v634_v24 }
 0x980   :  { %1729 = vtanh.f32 %v644_v26 }
 0x98d   :  { %v1730_v30 = vpop.eup %1729 }
 0x98e   :  { %647 = vrot.lane.b32.xlu0 %v1730_v30, %s2052_s24 }
 0xa00   :  { %v648_v35 = vpop.permute.xlu0 %647 }
 0xa01   :  { %v650_v36 = vmul.f32 %v1728_v20, %v648_v35 }
 0xa03   :  { %v660_v39 = vmul.f32 %v659_v34, %v650_v36 }
 0xa05   :  { %v663_v40 = vadd.f32 %v662_v37, %v660_v39 }
 0xa07   :  { %v664_v42 = vmax.f32 %v663_v40, 0.0 }
 0xa09   :  { %v665_v43 = vsel %vm434_vm3, %v657_v41, %v664_v42 }
 0xa0a   :  { %677 = vrot.lane.b32.xlu1 %v665_v43, %s2054_s1 }
 0xa7c   :  { %v678_v45 = vpop.permute.xlu1 %677 }
 0xa7d   :  { %1629 = vmatmul.mubr.msk.f32.vlgmr.msra.gmra.mxu0 %vm545_vm4, %v678_v45 }
 0xa7e   :  { %1637 = vmatpush3.msk.msra.mxu0 %vm899_vm5, %v883_v29  ;;  %1638 = vmatprep.mubr.msk.f32.mxu0 %vm892_vm6, %v881_v44 }
 0xa7f   :  { %1646 = vmatprep.subr.mxu0 %v2048_v2 }
 0xa81   :  { %1639 = vmatmul.mubr.msk.f32.vlgmr.msra.gmra.mxu0 %vm892_vm6, %v882_v46 }
 0xa82   :  { %1648 = vmatprep.mubr.msk.f32.mxu0 %vm2049_vm1, %v2048_v2  ;;  %1647 = vmatpush3.msk.msra.mxu0 %vm434_vm3, %v884_v10 }
 0xb3d   :  { %v747_v48 = vpop.f32.mrf.mxu0 }
 0xb3e   :  { %v2291_v49 = vadd.f32 %v1541_v47, %v747_v48 }
 0xb3f   :  { %v1630_v50 = vpop.f32.mrf.mxu0 }
 0xb40   :  { %1731 = vtanh.f32 %v2291_v49  ;;  %v1543_v58 = vmul.f32 -1.442695, %v2291_v49 }
 0xb41   :  { %v1640_v52 = vpop.f32.mrf.mxu0 }
 0xb42   :  { %v2294_v53 = vadd.f32 %v1640_v52, %v1547_v51 }
 0xb43   :  { %v969_v54 = vpop.f32.mrf.mxu0 }
 0xb44   :  { %v970_v55 = vadd.f32 %v1547_v51, %v969_v54 }
 0xb46   :  { %1733 = vtanh.f32 %v970_v55  ;;  %v1551_v59 = vmul.f32 -1.442695, %v970_v55 }
 0xb47   :  { %1735 = vpow2.f32 %v1543_v58 }
 0xb48   :  { %1737 = vpow2.f32 %v1551_v59 }
 0xb4d   :  { %v1732_v56 = vpop.eup %1731 }
 0xb4e   :  { %759 = vrot.lane.b32.xlu0 %v1732_v56, %s2056_s3 }
 0xb53   :  { %v1734_v57 = vpop.eup %1733 }
 0xb54   :  { %986 = vrot.lane.b32.xlu1 %v1734_v57, %s2056_s3  ;;  %v1736_v60 = vpop.eup %1735 }
 0xb55   :  { %v754_v61 = vadd.f32 1.0, %v1736_v60  ;;  %v1738_v62 = vpop.eup %1737 }
 0xb56   :  { %v981_v63 = vadd.f32 1.0, %v1738_v62 }
 0xb57   :  { %1739 = vrcp.f32 %v754_v61 }
 0xb58   :  { %1741 = vrcp.f32 %v981_v63 }
 0xb64   :  { %v1740_v0 = vpop.eup %1739 }
 0xb65   :  { %v1742_v4 = vpop.eup %1741 }
 0xbc0   :  { %v760_v1 = vpop.permute.xlu0 %759 }
 0xbc1   :  { %v2299_v3 = vmul.f32 %v1740_v0, %v760_v1 }
 0xbc3   :  { %1743 = vtanh.f32 %v2299_v3  ;;  %v860_v1 = vrot.slane %v2299_v3, 4  ;;  %v2060_v3 = vmov 15  }
 0xbc4   :  { %1691 = vset.pattern.permute.xlu0 %v2060_v3 }
 0xbc6   :  { %v987_v5 = vpop.permute.xlu1 %986 }
 0xbc7   :  { %v989_v6 = vmul.f32 %v1742_v4, %v987_v5 }
 0xbc9   :  { %1745 = vtanh.f32 %v989_v6  ;;  %v1086_v15 = vrot.slane %v989_v6, 4 }
 0xbd0   :  { %v1744_v7 = vpop.eup %1743 }
 0xbd1   :  { %765 = vrot.lane.b32.xlu0 %v1744_v7, %s2057_s26 }
 0xbd6   :  { %v1746_v9 = vpop.eup %1745 }
 0xbd7   :  { %992 = vrot.lane.b32.xlu1 %v1746_v9, %s2057_s26 }
 0xc43   :  { %v766_v11 = vpop.permute.xlu0 %765 }
 0xc44   :  { %v2307_v12 = vmul.f32 %v1740_v0, %v766_v11 }
 0xc46   :  { %770 = vrot.lane.b32.xlu0 %v2307_v12, %s2058_s9 }
 0xc49   :  { %v993_v13 = vpop.permute.xlu1 %992 }
 0xc4a   :  { %v2311_v14 = vmul.f32 %v1742_v4, %v993_v13 }
 0xc4c   :  { %997 = vrot.lane.b32.xlu1 %v2311_v14, %s2058_s9 }
 0xc50   :  { %1087 = vrot.lane.b32.xlu1 %v1086_v15, %s2059_s10 }
 0xcb8   :  { %v771_v16 = vpop.permute.xlu0 %770 }
 0xcb9   :  { %1634 = vmatmul.mubr.msk.f32.vlgmr.msra.gmra.mxu1 %vm772_vm7, %v771_v16  ;;  %v2061_v16 = vmov 13  }
 0xcba   :  { %1642 = vmatpush3.msk.msra.mxu1 %vm434_vm3, %v884_v10  ;;  %1643 = vmatprep.mubr.msk.f32.mxu1 %vm2049_vm1, %v2048_v2 }
 0xcbb   :  { %1651 = vmatprep.subr.mxu1 %v2048_v2  ;;  %1690 = vset.pattern.permute.xlu1 %v2061_v16 }
 0xcbe   :  { %v998_v17 = vpop.permute.xlu1 %997 }
 0xcbf   :  { %1644 = vmatmul.mubr.msk.f32.vlgmr.msra.gmra.mxu1 %vm772_vm7, %v998_v17 }
 0xcc0   :  { %1652 = vmatpush3.msk.msra.mxu1 %vm434_vm3, %v884_v10  ;;  %1653 = vmatprep.mubr.msk.f32.mxu1 %vm2049_vm1, %v2048_v2 }
 0xcc2   :  { %v1088_v2 = vpop.permute.xlu1 %1087 }
 0xd79   :  { %v844_v18 = vpop.f32.mrf.mxu1 }
 0xd7a   :  { %v849_v51 = vrot.slane %v844_v18, 4 }
 0xd7b   :  { %v1635_v19 = vpop.f32.mrf.mxu1 }
 0xd7c   :  { %v851_v56 = vadd.f32 %v849_v51, %v2291_v49 }
 0xd7e   :  { %v1546_v59 = vmul.f32 -1.442695, %v851_v56 }
 0xd7f   :  { %v1070_v20 = vpop.f32.mrf.mxu1 }
 0xd80   :  { %v1075_v21 = vrot.slane %v1070_v20, 4 }
 0xd81   :  { %v1645_v22 = vpop.f32.mrf.mxu1 }
 0xd82   :  { %v1077_v23 = vadd.f32 %v1075_v21, %v970_v55 }
 0xd84   :  { %1747 = vtanh.f32 %v1077_v23  ;;  %v1554_v25 = vmul.f32 -1.442695, %v1077_v23 }
 0xd86   :  { %1749 = vpow2.f32 %v1554_v25 }
 0xd91   :  { %v1748_v24 = vpop.eup %1747 }
 0xd92   :  { %1092 = vrot.lane.b32.xlu0 %v1748_v24, %s2056_s3 }
 0xd93   :  { %v1750_v26 = vpop.eup %1749 }
 0xd94   :  { %v1081_v27 = vadd.f32 1.0, %v1750_v26  ;;  %v2062_v26 = vmov 14  }
 0xd96   :  { %1751 = vrcp.f32 %v1081_v27  ;;  %v2063_v27 = vmov 12  }
 0xda3   :  { %v1752_v28 = vpop.eup %1751 }
 0xda4   :  { %v1090_v31 = vmul.f32 %v1752_v28, %v1088_v2 }
 0xe04   :  { %v1093_v29 = vpop.permute.xlu0 %1092 }
 0xe05   :  { %v1095_v30 = vmul.f32 %v1752_v28, %v1093_v29 }
 0xe07   :  { %1097 = vrot.lane.b32.xlu0 %v1095_v30, %s2059_s10 }
 0xe79   :  { %v1098_v32 = vpop.permute.xlu0 %1097 }
 0xe7a   :  { %v1100_v33 = vadd.f32 %v1098_v32, %v1090_v31 }
 0xe7c   :  { %1753 = vtanh.f32 %v1100_v33  ;;  %v1192_v50 = vrot.slane %v1100_v33, 4 }
 0xe89   :  { %v1754_v34 = vpop.eup %1753 }
 0xe8a   :  { %1103 = vrot.lane.b32.xlu1 %v1754_v34, %s2037_s25  ;;  %v1359_v34 = vrot.slane %v2311_v14, 4 }
 0xefc   :  { %v1104_v35 = vpop.permute.xlu1 %1103 }
 0xefd   :  { %v2328_v36 = vmul.f32 %v1752_v28, %v1104_v35 }
 0xeff   :  { %v1108_v37 = vrot.slane %v2328_v36, 4 }
 0xf01   :  { %1109 = vrot.lane.b32.xlu0 %v1108_v37, %s2058_s9 }
 0xf73   :  { %v2332_v38 = vpop.permute.xlu0 %1109 }
 0xf74   :  { %1649 = vmatmul.mubr.msk.f32.vlgmr.msra.gmra.mxu0 %vm772_vm7, %v2332_v38 }
0x1034   :  { %v1179_v39 = vpop.f32.mrf.mxu0 }
0x1035   :  { %v1183_v40 = vadd.f32 %v1179_v39, %v2294_v53 }
0x1036   :  { %v1650_v41 = vpop.f32.mrf.mxu0 }
0x1037   :  { %1755 = vtanh.f32 %v1183_v40  ;;  %v1557_v43 = vmul.f32 -1.442695, %v1183_v40 }
0x1039   :  { %1757 = vpow2.f32 %v1557_v43 }
0x1044   :  { %v1756_v42 = vpop.eup %1755 }
0x1045   :  { %1196 = vrot.lane.b32.xlu1 %v1756_v42, %s2056_s3 }
0x1046   :  { %v1758_v44 = vpop.eup %1757 }
0x1047   :  { %v1187_v45 = vadd.f32 1.0, %v1758_v44 }
0x1049   :  { %1759 = vrcp.f32 %v1187_v45 }
0x1056   :  { %v1760_v46 = vpop.eup %1759 }
0x1057   :  { %v1194_v52 = vmul.f32 %v1760_v46, %v1192_v50  ;;  %v2064_v50 = vmov 1966171168  }
0x1058   :  { %v1396_v51 = vunpack.c.l.s4 %v2064_v50 }
0x10b7   :  { %v1197_v47 = vpop.permute.xlu1 %1196 }
0x10b8   :  { %v1199_v48 = vmul.f32 %v1760_v46, %v1197_v47 }
0x10ba   :  { %1201 = vrot.lane.b32.xlu0 %v1199_v48, %s2059_s10 }
0x112c   :  { %v1202_v54 = vpop.permute.xlu0 %1201 }
0x112d   :  { %v2339_v55 = vadd.f32 %v1202_v54, %v1194_v52  ;;  %v1398_v52 = vlaneseq }
0x112f   :  { %1761 = vtanh.f32 %v2339_v55  ;;  %v1298_v28 = vrot.slane %v2339_v55, 4 }
0x1130   :  { %1763 = vtanh.f32 %v851_v56 }
0x1131   :  { %1765 = vpow2.f32 %v1546_v59 }
0x113c   :  { %v1762_v57 = vpop.eup %1761 }
0x113d   :  { %1207 = vrot.lane.b32.xlu1 %v1762_v57, %s2037_s25  ;;  %v1764_v58 = vpop.eup %1763  ;;  %v1397_v57 = vunpack.c.0.s8 %v1396_v51 }
0x113e   :  { %v1766_v60 = vpop.eup %1765 }
0x113f   :  { %v855_v61 = vadd.f32 1.0, %v1766_v60 }
0x1141   :  { %866 = vrot.lane.b32.xlu1 %v1764_v58, %s2056_s3  ;;  %1767 = vrcp.f32 %v855_v61  ;;  %v1399_v58 = vshrl.u32 %v1398_v52, 7 }
0x114e   :  { %v1768_v49 = vpop.eup %1767 }
0x11af   :  { %v1208_v62 = vpop.permute.xlu1 %1207 }
0x11b0   :  { %v2345_v63 = vmul.f32 %v1760_v46, %v1208_v62 }
0x11b2   :  { %1212 = vrot.lane.b32.xlu0 %v2345_v63, %s2058_s9  ;;  %v1378_v35 = vrot.slane %v2345_v63, 4 }
0x11b3   :  { %v867_v0 = vpop.permute.xlu1 %866 }
0x11b4   :  { %v869_v4 = vmul.f32 %v1768_v49, %v867_v0 }
0x11b6   :  { %861 = vrot.lane.b32.xlu0 %v860_v1, %s2059_s10  ;;  %871 = vrot.lane.b32.xlu1 %v869_v4, %s2059_s10  ;;  %v1451_v4 = vsub.s32 0, %v1399_v58 }
0x1224   :  { %v1213_v5 = vpop.permute.xlu0 %1212 }
0x1225   :  { %1654 = vmatmul.mubr.msk.f32.vlgmr.msra.gmra.mxu1 %vm772_vm7, %v1213_v5 }
0x1228   :  { %v862_v6 = vpop.permute.xlu0 %861  ;;  %v872_v13 = vpop.permute.xlu1 %871 }
0x1229   :  { %v864_v8 = vmul.f32 %v1768_v49, %v862_v6 }
0x122b   :  { %v874_v15 = vadd.f32 %v872_v13, %v864_v8 }
0x12e5   :  { %v1282_v7 = vpop.f32.mrf.mxu1 }
0x12e6   :  { %v1287_v9 = vrot.slane %v1282_v7, 4 }
0x12e7   :  { %v1655_v10 = vpop.f32.mrf.mxu1 }
0x12e8   :  { %v1289_v11 = vadd.f32 %v1287_v9, %v2294_v53 }
0x12ea   :  { %1769 = vtanh.f32 %v1289_v11  ;;  %v1560_v19 = vmul.f32 -1.442695, %v1289_v11 }
0x12eb   :  { %1771 = vtanh.f32 %v874_v15 }
0x12ec   :  { %1773 = vpow2.f32 %v1560_v19 }
0x12f7   :  { %v1770_v17 = vpop.eup %1769 }
0x12f8   :  { %1302 = vrot.lane.b32.xlu0 %v1770_v17, %s2056_s3  ;;  %v1772_v18 = vpop.eup %1771 }
0x12f9   :  { %v1774_v20 = vpop.eup %1773 }
0x12fa   :  { %v1293_v21 = vadd.f32 1.0, %v1774_v20 }
0x12fc   :  { %877 = vrot.lane.b32.xlu0 %v1772_v18, %s2037_s25  ;;  %1775 = vrcp.f32 %v1293_v21 }
0x1309   :  { %v1776_v53 = vpop.eup %1775 }
0x130a   :  { %v1300_v29 = vmul.f32 %v1776_v53, %v1298_v28 }
0x136a   :  { %v1303_v22 = vpop.permute.xlu0 %1302 }
0x136b   :  { %v1305_v23 = vmul.f32 %v1776_v53, %v1303_v22 }
0x136d   :  { %1307 = vrot.lane.b32.xlu1 %v1305_v23, %s2059_s10 }
0x136e   :  { %v878_v24 = vpop.permute.xlu0 %877 }
0x136f   :  { %v880_v25 = vmul.f32 %v1768_v49, %v878_v24 }
0x1371   :  { %1385 = vperm.xlu0 %1691, %v880_v25   ;;  %1365 = vperm.xlu1 %1690, %v880_v25  }
0x1375   :  { %1693 = vset.pattern.permute.xlu0 %v2062_v26  ;;  %1692 = vset.pattern.permute.xlu1 %v2063_v27 }
0x1376   :  { %1375 = vperm.xlu0 %1693, %v880_v25  }
0x137a   :  { %1695 = vset.pattern.permute.xlu0 %v2060_v3 }
0x13df   :  { %v1308_v30 = vpop.permute.xlu1 %1307 }
0x13e0   :  { %v1310_v2 = vadd.f32 %v1308_v30, %v1300_v29 }
0x13e2   :  { %1777 = vtanh.f32 %v1310_v2 }
0x13ec   :  { %v1366_v31 = vpop.permute.xlu1 %1365  ;;  %v1386_v39 = vpop.permute.xlu0 %1385 }
0x13ed   :  { %v1368_v32 = vmul.f32 %v1366_v31, %v2328_v36 }
0x13ef   :  { %v1778_v33 = vpop.eup %1777  ;;  %1370 = vrot.lane.b32.xlu0 %v1368_v32, %s2058_s9 }
0x13f0   :  { %1313 = vrot.lane.b32.xlu1 %v1778_v33, %s2037_s25  ;;  %s2065_s25 = smov [#allocation24]  }
0x13f1   :  { %v1376_v46 = vpop.permute.xlu0 %1375  ;;  %s1508_s27 = sshll.u32 %s2065_s25, 4  ;;  %s1509_s27 = int_to_ptr.vmem [resolvable:$true] %s1508_s27 }
0x13f2   :  { %s1991_s11 = scalar_lea.vmem %s1509_s27, 128  ;;  %p1996_p4 = scmp.lt.s32.totalorder %s1509_s27, %s1509_s27 }
0x13f3   :  { %1340 = vperm.xlu0 %1695, %v2307_v12   ;;  %p1992_p3 = scmp.ne.s32.totalorder %s1509_s27, %s1991_s11  ;;  %p1997_p5 = scmp.lt.s32.totalorder %s1991_s11, %s1991_s11 }
0x13f4   :  { %1356 = vperm.xlu1 %1692, %v880_v25  }
0x13f5   :  { %p1998_p6 = por %p1997_p5, %p1996_p4 }
0x13f7   :  { %1696 = vset.pattern.permute.xlu0 %v2063_v27  ;;  %p1999_p7 = pnand %p1998_p6, %p1992_p3 }
0x13f8   :  { %1694 = vset.pattern.permute.xlu1 %v2061_v16  ;;  %1318 = vperm.xlu0 %1696, %v2307_v12  }
0x13f9   :  { %1323 = vperm.xlu1 %1694, %v2307_v12  }
0x13fc   :  { %1698 = vset.pattern.permute.xlu0 %v2060_v3 }
0x13fd   :  { %1360 = vrot.lane.b32.xlu1 %v1359_v34, %s2058_s9 }
0x13fe   :  { %1697 = vset.pattern.permute.xlu1 %v2062_v26 }
0x1401   :  { %1379 = vrot.lane.b32.xlu1 %v1378_v35, %s2058_s9 }
0x1461   :  { %v1371_v55 = vpop.permute.xlu0 %1370 }
0x1462   :  { %v1314_v36 = vpop.permute.xlu1 %1313 }
0x1463   :  { %v1316_v37 = vmul.f32 %v1776_v53, %v1314_v36 }
0x1465   :  { %v1388_v40 = vmul.f32 %v1386_v39, %v1316_v37  ;;  %v1344_v41 = vrot.slane %v1316_v37, 4 }
0x1467   :  { %1390 = vrot.lane.b32.xlu1 %v1388_v40, %s2058_s9 }
0x146b   :  { %1345 = vrot.lane.b32.xlu1 %v1344_v41, %s2058_s9 }
0x146f   :  { %v1357_v42 = vpop.permute.xlu1 %1356  ;;  %1334 = vperm.xlu1 %1697, %v2307_v12   ;;  %v1400_v12 = vsub.s32 %v1397_v57, %v1399_v58 }
0x1474   :  { %v1324_v43 = vpop.permute.xlu1 %1323 }
0x1475   :  { %v1327_v44 = vmul.f32 %v1324_v43, %v2332_v38  ;;  %v1341_v38 = vpop.permute.xlu0 %1340 }
0x1477   :  { %1329 = vrot.lane.b32.xlu1 %v1327_v44, %s2057_s26 }
0x1478   :  { %v1361_v45 = vpop.permute.xlu1 %1360 }
0x1479   :  { %v1363_v48 = vmul.f32 %v1361_v45, %v1357_v42  ;;  %v1319_v16 = vpop.permute.xlu0 %1318 }
0x147a   :  { %v1321_v18 = vmul.f32 %v1319_v16, %v2311_v14 }
0x147b   :  { %v1373_v56 = vadd.f32 %v1371_v55, %v1363_v48 }
0x147c   :  { %v1380_v47 = vpop.permute.xlu1 %1379 }
0x147d   :  { %v1382_v54 = vmul.f32 %v1380_v47, %v1376_v46 }
0x147f   :  { %v1383_v59 = vadd.f32 %v1382_v54, %v1373_v56 }
0x14d9   :  { %v1391_v60 = vpop.permute.xlu1 %1390 }
0x14da   :  { %v1393_v61 = vadd.f32 %v1391_v60, %v1383_v59 }
0x14dc   :  { %v1424_v62 = vcombine.high %v1393_v61, %v1393_v61 }
0x14dd   :  { %v1346_v49 = vpop.permute.xlu1 %1345 }
0x14de   :  { %v1431_v0 = vrot.slane %v1424_v62, %v1400_v12  ;;  %v1348_v1 = vmul.f32 %v1346_v49, %v1341_v38 }
0x14e0   :  { %v1432_v5 = vcombine.high %v1431_v0, %v1431_v0  ;;  %v1439_v6 = vrot.slane %v1431_v0, %v1400_v12  ;;  %1350 = vrot.lane.b32.xlu0 %v1348_v1, %s2057_s26 }
0x14e2   :  { %v1452_v7 = vrot.slane %v1439_v6, %v1451_v4  ;;  %v1446_v8 = vrot.slane %v1432_v5, %v1400_v12  ;;  %v1447_v9 = vcombine.high %v1439_v6, %v1439_v6 }
0x14e4   :  { %1465 = vrot.lane.b32.xlu1 %v1452_v7, %s2057_s26  ;;  %v1456_v10 = vrot.slane %v1446_v8, %v1451_v4  ;;  %v1448_v11 = vcombine.high %v1446_v8, %v1446_v8  ;;  %v1460_v13 = vrot.slane %v1447_v9, %v1451_v4 }
0x14e6   :  { %1467 = vrot.lane.b32.xlu0 %v1456_v10, %s2057_s26  ;;  %v1464_v15 = vrot.slane %v1448_v11, %v1451_v4 }
0x14e8   :  { %1469 = vrot.lane.b32.xlu1 %v1460_v13, %s2057_s26 }
0x14ea   :  { %1471 = vrot.lane.b32.xlu0 %v1464_v15, %s2057_s26  ;;  %v1335_v3 = vpop.permute.xlu1 %1334 }
0x14eb   :  { %v1337_v20 = vmul.f32 %v1335_v3, %v2345_v63 }
0x14ee   :  { %v1330_v17 = vpop.permute.xlu1 %1329 }
0x14ef   :  { %v1332_v19 = vadd.f32 %v1330_v17, %v1321_v18 }
0x14f1   :  { %v1338_v21 = vadd.f32 %v1337_v20, %v1332_v19 }
0x1552   :  { %v1351_v53 = vpop.permute.xlu0 %1350 }
0x1553   :  { %v1353_v22 = vadd.f32 %v1351_v53, %v1338_v21 }
0x1555   :  { %v1401_v23 = vrot.slane %v1353_v22, %v1400_v12 }
0x1556   :  { %v1466_v24 = vpop.permute.xlu1 %1465 }
0x1557   :  { %v1402_v25 = vcombine.high %v1401_v23, %v1401_v23  ;;  %v1409_v26 = vrot.slane %v1401_v23, %v1400_v12 }
0x1558   :  { %v1468_v27 = vpop.permute.xlu0 %1467 }
0x1559   :  { %v1478_v28 = vsel %vm1477_vm8, %v1409_v26, %v1466_v24  ;;  %v1416_v29 = vrot.slane %v1402_v25, %v1400_v12  ;;  %v1417_v30 = vcombine.high %v1409_v26, %v1409_v26 }
0x155a   :  { %1486 = vrot.lane.b32.xlu1 %v1478_v28, %s2058_s9  ;;  %v1470_v2 = vpop.permute.xlu1 %1469 }
0x155b   :  { %v1479_v31 = vsel %vm1477_vm8, %v1416_v29, %v1468_v27  ;;  %v1418_v14 = vcombine.high %v1416_v29, %v1416_v29  ;;  %v1480_v63 = vsel %vm1477_vm8, %v1417_v30, %v1470_v2 }
0x155c   :  { %v1472_v32 = vpop.permute.xlu0 %1471  ;;  %1488 = vrot.lane.b32.xlu0 %v1479_v31, %s2058_s9 }
0x155d   :  { %v1481_v33 = vsel %vm1477_vm8, %v1418_v14, %v1472_v32 }
0x155e   :  { %1490 = vrot.lane.b32.xlu1 %v1480_v63, %s2058_s9 }
0x1560   :  { %1492 = vrot.lane.b32.xlu0 %v1481_v33, %s2058_s9 }
0x15cc   :  { %v1487_v34 = vpop.permute.xlu1 %1486 }
0x15cd   :  { %1499 = vst.msk [vmem:[#allocation24] sm:$0x3] %vm1498_vm9, %v1487_v34 }
0x15ce   :  { %v1489_v35 = vpop.permute.xlu0 %1488 }
0x15cf   :  { %1500 = vst.msk [vmem:[#allocation24 + $0x2] sm:$0x3] %vm1498_vm9, %v1489_v35 }
0x15d0   :  { %v1491_v36 = vpop.permute.xlu1 %1490 }
0x15d1   :  { %1501 = vst.msk [vmem:[#allocation24 + $0x4] sm:$0x3] %vm1498_vm9, %v1491_v36 }
0x15d2   :  { %v1493_v37 = vpop.permute.xlu0 %1492 }
0x15d3   :  { %1502 = vst.msk [vmem:[#allocation24 + $0x6] sm:$0x3] %vm1498_vm9, %v1493_v37 }
0x15d4   :  { %2002 = shalt.err (!%p1999_p7)
}
0x15d5   :  { %s2066_s4 = smov 2  }
0x15d6   :  { %1514 = dma.vmem_to_hbm [thread:$0]  %s1509_s27, 128, %s2407_s18, [#allocation4], %s2052_s24, %s2052_s24, %s2066_s4  }
0x15d7   :  { %2031 = dma.done.wait [#allocation4], 128  }
0x15d8   :  { %2032 = vsyncadd [#allocation4], 4294967168 }
0x15d9   :  { %1518 = vsyncpa [#allocation3], 1 }
0x15da   :  { %1519 = vsyncpa [#allocation7], 1 }
0x15db   :  { %1520 = vsyncpa [#allocation16], 1 }
0x15dc   :  { %1521 = vsyncpa [#allocation19], 1 }
0x15dd   :  { %1522 = vsyncpa [#allocation22], 1 }
0x15de   :  { %1523 = vsyncpa [#allocation4], 1 }
0x15df   :  { %1524 = vsyncpa [#allocation5], 1 }
0x15e0   :  { %1525 = vsyncpa [#allocation10], 1 }
0x15e1   :  { %1526 = vsyncpa [#allocation14], 1 }

</bundles_post_ra>
